<compile_context>
chip_gen: v7x
topology: tpu7x:2x2x1
jax: 0.10.0
libtpu: 0.0.40
codegen_flags: <defaults>
</compile_context>

<pallas_src>
import math
from functools import partial

import jax
import jax.numpy as jnp
from jax.experimental import pallas as pl
from jax.experimental.pallas import tpu as pltpu

# ----- small synthetic DistilBERT-like config -----
VOCAB    = 100
MAX_POS  = 32
HIDDEN   = 64
N_HEADS  = 2
HEAD_DIM = HIDDEN // N_HEADS
FFN      = 128
N_LAYERS = 2
LN_EPS   = 1e-12
# 128-lane-aligned Q/K/V segment width in the fused QKV weight (at real
# H=768 this is just H; for the toy H=64 it pads each segment to 128).
SEG = max(128, ((HIDDEN + 127) // 128) * 128)


# ---------------- fused encoder kernel (one batch element per grid step) ----
def _encoder_kernel(x_ref, mask_ref,
                    emb_g_ref, emb_b_ref,
                    wqkv_ref, bqkv_ref, wo_ref, bo_ref,
                    sa_g_ref, sa_b_ref,
                    w1_ref, b1_ref, w2_ref, b2_ref,
                    out_g_ref, out_b_ref,
                    o_ref, *, n_heads):
    _, S, H = x_ref.shape                 # block = (1, S, H)
    dh = H // n_heads
    n_layers = wqkv_ref.shape[0]
    seg = wqkv_ref.shape[2] // 3          # 128-lane-aligned QKV segment width

    def layernorm(x, g, b):
        # stats in f32, normalized activation carried forward as bf16
        x = x.astype(jnp.float32)
        mu = jnp.mean(x, axis=-1, keepdims=True)
        var = jnp.mean(jnp.square(x - mu), axis=-1, keepdims=True)
        y = (x - mu) * jax.lax.rsqrt(var + LN_EPS) * g + b
        return y.astype(jnp.bfloat16)

    def matmul(a, w_bf16, bias_f32):
        # bf16 x bf16 on the MXU, f32 accumulation; bias add in f32.
        return jnp.dot(a.astype(jnp.bfloat16), w_bf16,
                       preferred_element_type=jnp.float32) + bias_f32

    # --- embedding LayerNorm (no residual, no zero tensor) ---
    x = layernorm(x_ref[...].reshape(S, H), emb_g_ref[...], emb_b_ref[...])

    # Additive key mask (0 keep / -1e9 pad), materialized ONCE before the
    # layer loop (JAX does not CSE broadcast_in_dim).
    mask = jnp.broadcast_to(mask_ref[...], (n_heads, S, S))          # f32

    # TODO(synk): for 6+ layers at real shapes, replace the static unroll with
    # lax.fori_loop / a layer grid axis and stream per-layer weights
    # (emit_pipeline / Buffered(2)) instead of keeping all layers VMEM-resident.
    for l in range(n_layers):                                        # unrolled
        # --- fused QKV projection (attention scale folded into the Q slice;
        #     segments start at 128-aligned lane offsets 0 / seg / 2*seg) ---
        qkv = matmul(x, wqkv_ref[l], bqkv_ref[l]).astype(jnp.bfloat16)  # [S,3*seg]
        q = qkv[:, 0:H].reshape(S, n_heads, dh)
        k = qkv[:, seg:seg + H].reshape(S, n_heads, dh)
        v = qkv[:, 2 * seg:2 * seg + H].reshape(S, n_heads, dh)

        # --- multi-head attention: one batched contraction over the head axis
        s = jnp.einsum('qhd,khd->hqk', q, k,
                       preferred_element_type=jnp.float32)           # [nh,S,S]
        s = s + mask
        s = s - jnp.max(s, axis=-1, keepdims=True)
        p = jnp.exp(s)
        p = p * pl.reciprocal(jnp.sum(p, axis=-1, keepdims=True), approx=True)
        ctx = jnp.einsum('hqk,khd->qhd', p.astype(jnp.bfloat16), v,
                         preferred_element_type=jnp.float32)         # [S,nh,dh]
        ctx = ctx.reshape(S, H)                                      # lane-dense

        attn_out = matmul(ctx, wo_ref[l], bo_ref[l])                 # f32
        x = layernorm(attn_out + x, sa_g_ref[l], sa_b_ref[l])        # bf16

        # --- feed-forward ---
        h1 = matmul(x, w1_ref[l], b1_ref[l])
        # TODO(synk): HF DistilBERT uses exact erf GELU; tanh approximation is
        # used here for guaranteed Mosaic lowering (difference is tiny).
        h1 = jax.nn.gelu(h1, approximate=True)
        ffn_out = matmul(h1, w2_ref[l], b2_ref[l])
        x = layernorm(ffn_out + x, out_g_ref[l], out_b_ref[l])       # bf16

    # Only the CLS token (position 0) is consumed downstream -> write just it.
    o_ref[...] = x[0:1, :].astype(jnp.float32).reshape(1, 1, H)


# ---------------- params ----------------
def init_params(key):
    k_emb, k_pos, k_layers = jax.random.split(key, 3)
    std = 0.02
    params = {
        "word_emb": std * jax.random.normal(k_emb, (VOCAB, HIDDEN), jnp.float32),
        "pos_emb":  std * jax.random.normal(k_pos, (MAX_POS, HIDDEN), jnp.float32),
        "emb_ln_g": jnp.ones((HIDDEN,), jnp.float32),
        "emb_ln_b": jnp.zeros((HIDDEN,), jnp.float32),
        "layers": [],
    }
    lkeys = jax.random.split(k_layers, N_LAYERS)
    for i in range(N_LAYERS):
        ks = jax.random.split(lkeys[i], 6)
        params["layers"].append({
            "wq": std * jax.random.normal(ks[0], (HIDDEN, HIDDEN), jnp.float32),
            "bq": jnp.zeros((HIDDEN,), jnp.float32),
            "wk": std * jax.random.normal(ks[1], (HIDDEN, HIDDEN), jnp.float32),
            "bk": jnp.zeros((HIDDEN,), jnp.float32),
            "wv": std * jax.random.normal(ks[2], (HIDDEN, HIDDEN), jnp.float32),
            "bv": jnp.zeros((HIDDEN,), jnp.float32),
            "wo": std * jax.random.normal(ks[3], (HIDDEN, HIDDEN), jnp.float32),
            "bo": jnp.zeros((HIDDEN,), jnp.float32),
            "sa_ln_g": jnp.ones((HIDDEN,), jnp.float32),
            "sa_ln_b": jnp.zeros((HIDDEN,), jnp.float32),
            "w1": std * jax.random.normal(ks[4], (HIDDEN, FFN), jnp.float32),
            "b1": jnp.zeros((FFN,), jnp.float32),
            "w2": std * jax.random.normal(ks[5], (FFN, HIDDEN), jnp.float32),
            "b2": jnp.zeros((HIDDEN,), jnp.float32),
            "out_ln_g": jnp.ones((HIDDEN,), jnp.float32),
            "out_ln_b": jnp.zeros((HIDDEN,), jnp.float32),
        })
    return params


def pack_params(params):
    """Stack per-layer weights for the fused kernel: fuse QKV with 128-lane
    aligned segments, fold the attention scale into Q, cast matmul weights to
    bf16 (biases / LayerNorm params stay f32).

    NOTE: the scale 1/sqrt(head_dim) is folded into wq/bq here — do not reuse
    the packed wqkv with a different head_dim."""
    scale = 1.0 / math.sqrt(HEAD_DIM)
    pad_w = lambda w: jnp.pad(w, ((0, 0), (0, SEG - HIDDEN)))
    pad_b = lambda b: jnp.pad(b, ((0, SEG - HIDDEN),))

    def stack(fn):
        return jnp.stack([fn(l) for l in params["layers"]])

    return {
        "word_emb": params["word_emb"],
        "pos_emb":  params["pos_emb"],
        "emb_ln_g": params["emb_ln_g"].reshape(1, HIDDEN),
        "emb_ln_b": params["emb_ln_b"].reshape(1, HIDDEN),
        "wqkv": stack(lambda l: jnp.concatenate(
            [pad_w(l["wq"] * scale), pad_w(l["wk"]), pad_w(l["wv"])],
            axis=1)).astype(jnp.bfloat16),                       # [L, H, 3*SEG]
        "bqkv": stack(lambda l: jnp.concatenate(
            [pad_b(l["bq"] * scale), pad_b(l["bk"]), pad_b(l["bv"])])[None, :]),
        "wo": stack(lambda l: l["wo"]).astype(jnp.bfloat16),
        "bo": stack(lambda l: l["bo"][None, :]),
        "sa_ln_g": stack(lambda l: l["sa_ln_g"][None, :]),
        "sa_ln_b": stack(lambda l: l["sa_ln_b"][None, :]),
        "w1": stack(lambda l: l["w1"]).astype(jnp.bfloat16),
        "b1": stack(lambda l: l["b1"][None, :]),
        "w2": stack(lambda l: l["w2"]).astype(jnp.bfloat16),
        "b2": stack(lambda l: l["b2"][None, :]),
        "out_ln_g": stack(lambda l: l["out_ln_g"][None, :]),
        "out_ln_b": stack(lambda l: l["out_ln_b"][None, :]),
    }


# ---------------- forward (DistilBERT encoder, return CLS token) ------------
@jax.jit
def text_encoder_forward(packed, input_ids, attention_mask):
    B, S = input_ids.shape
    H = HIDDEN

    # TODO(synk): embedding gather stays in XLA (jnp.take); for a real
    # 30k x 768 vocab, move it into the kernel via scalar-prefetched ids +
    # DMA row gather to avoid materializing [B,S,H] embeddings in HBM.
    we = jnp.take(packed["word_emb"], input_ids, axis=0)              # [B, S, H]
    pe = packed["pos_emb"][:S][None]                                  # [1, S, H]
    x = (we + pe).astype(jnp.float32)                                 # [B, S, H]

    # additive mask: 0.0 keep, -1e9 pad, shaped [B, 1, S]
    mask_add = ((attention_mask.astype(jnp.float32) - 1.0) * 1e9).reshape(B, 1, S)

    args = (x, mask_add,
            packed["emb_ln_g"], packed["emb_ln_b"],
            packed["wqkv"], packed["bqkv"], packed["wo"], packed["bo"],
            packed["sa_ln_g"], packed["sa_ln_b"],
            packed["w1"], packed["b1"], packed["w2"], packed["b2"],
            packed["out_ln_g"], packed["out_ln_b"])
    n_weight_args = len(args) - 2

    # Whole encoder in one pallas_call. Batch is a "parallel" grid axis (one
    # batch element / TensorCore slice per step); all weights are whole-array
    # VMEM-resident (tiny here).
    # TODO(synk): at real DistilBERT shapes (H=768, FFN=3072, S=512, 6 layers,
    # ~85 MB bf16 weights), stream per-layer weights (layer grid axis or
    # emit_pipeline double-buffer), tile rows in 128/256 multiples, and raise
    # vmem_limit_bytes via pltpu.CompilerParams instead of full residency.
    cls = pl.pallas_call(
        partial(_encoder_kernel, n_heads=N_HEADS),
        out_shape=jax.ShapeDtypeStruct((B, 1, H), jnp.float32),
        grid=(B,),
        in_specs=[pl.BlockSpec((1, S, H), lambda b: (b, 0, 0)),
                  pl.BlockSpec((1, 1, S), lambda b: (b, 0, 0))]
                 + [pl.BlockSpec(memory_space=pltpu.MemorySpace.VMEM)]
                 * n_weight_args,
        out_specs=pl.BlockSpec((1, 1, H), lambda b: (b, 0, 0)),
        compiler_params=pltpu.CompilerParams(
            dimension_semantics=("parallel",)),
    )(*args)

    # TextEncoder.forward returns output.last_hidden_state[:, 0, :]  (CLS)
    return cls.reshape(B, H)


if __name__ == "__main__":
    key = jax.random.PRNGKey(0)
    kp, kid = jax.random.split(key)
    params = init_params(kp)
    packed = pack_params(params)

    B, S = 2, 8
    input_ids = jax.random.randint(kid, (B, S), 0, VOCAB, dtype=jnp.int32)
    attention_mask = jnp.array([[1, 1, 1, 1, 1, 1, 1, 1],
                                [1, 1, 1, 1, 1, 1, 0, 0]], dtype=jnp.int32)

    cls_emb = text_encoder_forward(packed, input_ids, attention_mask)
    cls_emb = jax.block_until_ready(cls_emb)
    assert cls_emb.shape == (B, HIDDEN) and cls_emb.dtype == jnp.float32
    assert bool(jnp.all(jnp.isfinite(cls_emb)))
    print("KERNEL_OK")
</pallas_src>

<mosaic_0001>
module attributes {stable_mosaic.version = 11 : i64} {
  func.func @_encoder_kernel(%arg0: i32, %arg1: memref<1x8x64xf32, #tpu.memory_space<vmem>>, %arg2: memref<1x1x8xf32, #tpu.memory_space<vmem>>, %arg3: memref<1x64xf32, #tpu.memory_space<vmem>>, %arg4: memref<1x64xf32, #tpu.memory_space<vmem>>, %arg5: memref<2x64x384xbf16, #tpu.memory_space<vmem>>, %arg6: memref<2x1x384xf32, #tpu.memory_space<vmem>>, %arg7: memref<2x64x64xbf16, #tpu.memory_space<vmem>>, %arg8: memref<2x1x64xf32, #tpu.memory_space<vmem>>, %arg9: memref<2x1x64xf32, #tpu.memory_space<vmem>>, %arg10: memref<2x1x64xf32, #tpu.memory_space<vmem>>, %arg11: memref<2x64x128xbf16, #tpu.memory_space<vmem>>, %arg12: memref<2x1x128xf32, #tpu.memory_space<vmem>>, %arg13: memref<2x128x64xbf16, #tpu.memory_space<vmem>>, %arg14: memref<2x1x64xf32, #tpu.memory_space<vmem>>, %arg15: memref<2x1x64xf32, #tpu.memory_space<vmem>>, %arg16: memref<2x1x64xf32, #tpu.memory_space<vmem>>, %arg17: memref<1x1x64xf32, #tpu.memory_space<vmem>>) attributes {dimension_semantics = [#tpu.dimension_semantics<parallel>], iteration_bounds = array<i64: 2>, scalar_prefetch = 0 : i64, scratch_operands = 0 : i64, tpu.core_type = #tpu.core_type<tc>, window_params = [{transform_indices = @transform_0, window_bounds = array<i64: 1, 8, 64>}, {transform_indices = @transform_1, window_bounds = array<i64: 1, 1, 8>}, {pipeline_mode = #tpu.pipeline_mode<synchronous>, transform_indices = @transform_2, window_bounds = array<i64: 1, 64>}, {pipeline_mode = #tpu.pipeline_mode<synchronous>, transform_indices = @transform_3, window_bounds = array<i64: 1, 64>}, {pipeline_mode = #tpu.pipeline_mode<synchronous>, transform_indices = @transform_4, window_bounds = array<i64: 2, 64, 384>}, {pipeline_mode = #tpu.pipeline_mode<synchronous>, transform_indices = @transform_5, window_bounds = array<i64: 2, 1, 384>}, {pipeline_mode = #tpu.pipeline_mode<synchronous>, transform_indices = @transform_6, window_bounds = array<i64: 2, 64, 64>}, {pipeline_mode = #tpu.pipeline_mode<synchronous>, transform_indices = @transform_7, window_bounds = array<i64: 2, 1, 64>}, {pipeline_mode = #tpu.pipeline_mode<synchronous>, transform_indices = @transform_8, window_bounds = array<i64: 2, 1, 64>}, {pipeline_mode = #tpu.pipeline_mode<synchronous>, transform_indices = @transform_9, window_bounds = array<i64: 2, 1, 64>}, {pipeline_mode = #tpu.pipeline_mode<synchronous>, transform_indices = @transform_10, window_bounds = array<i64: 2, 64, 128>}, {pipeline_mode = #tpu.pipeline_mode<synchronous>, transform_indices = @transform_11, window_bounds = array<i64: 2, 1, 128>}, {pipeline_mode = #tpu.pipeline_mode<synchronous>, transform_indices = @transform_12, window_bounds = array<i64: 2, 128, 64>}, {pipeline_mode = #tpu.pipeline_mode<synchronous>, transform_indices = @transform_13, window_bounds = array<i64: 2, 1, 64>}, {pipeline_mode = #tpu.pipeline_mode<synchronous>, transform_indices = @transform_14, window_bounds = array<i64: 2, 1, 64>}, {pipeline_mode = #tpu.pipeline_mode<synchronous>, transform_indices = @transform_15, window_bounds = array<i64: 2, 1, 64>}, {transform_indices = @transform_16, window_bounds = array<i64: 1, 1, 64>}]} {
    %c0 = arith.constant 0 : index
    %c0_0 = arith.constant 0 : index
    %c0_1 = arith.constant 0 : index
    %0 = vector.load %arg1[%c0, %c0_0, %c0_1] : memref<1x8x64xf32, #tpu.memory_space<vmem>>, vector<1x8x64xf32>
    %1 = vector.shape_cast %0 : vector<1x8x64xf32> to vector<8x64xf32>
    %c0_2 = arith.constant 0 : index
    %c0_3 = arith.constant 0 : index
    %2 = vector.load %arg3[%c0_2, %c0_3] : memref<1x64xf32, #tpu.memory_space<vmem>>, vector<1x64xf32>
    %c0_4 = arith.constant 0 : index
    %c0_5 = arith.constant 0 : index
    %3 = vector.load %arg4[%c0_4, %c0_5] : memref<1x64xf32, #tpu.memory_space<vmem>>, vector<1x64xf32>
    %cst = arith.constant dense<0.000000e+00> : vector<8xf32>
    %4 = vector.multi_reduction <add>, %1, %cst [1] : vector<8x64xf32> to vector<8xf32>
    %5 = vector.shape_cast %4 : vector<8xf32> to vector<8x1xf32>
    %cst_6 = arith.constant 6.400000e+01 : f32
    %6 = vector.broadcast %cst_6 : f32 to vector<8x1xf32>
    %7 = arith.divf %5, %6 : vector<8x1xf32>
    %8 = vector.broadcast %7 : vector<8x1xf32> to vector<8x64xf32>
    %9 = arith.subf %1, %8 : vector<8x64xf32>
    %10 = arith.mulf %9, %9 : vector<8x64xf32>
    %cst_7 = arith.constant dense<0.000000e+00> : vector<8xf32>
    %11 = vector.multi_reduction <add>, %10, %cst_7 [1] : vector<8x64xf32> to vector<8xf32>
    %12 = vector.shape_cast %11 : vector<8xf32> to vector<8x1xf32>
    %cst_8 = arith.constant 6.400000e+01 : f32
    %13 = vector.broadcast %cst_8 : f32 to vector<8x1xf32>
    %14 = arith.divf %12, %13 : vector<8x1xf32>
    %15 = vector.broadcast %7 : vector<8x1xf32> to vector<8x64xf32>
    %16 = arith.subf %1, %15 : vector<8x64xf32>
    %cst_9 = arith.constant 9.99999996E-13 : f32
    %17 = vector.broadcast %cst_9 : f32 to vector<8x1xf32>
    %18 = arith.addf %14, %17 : vector<8x1xf32>
    %19 = math.rsqrt %18 : vector<8x1xf32>
    %20 = vector.broadcast %19 : vector<8x1xf32> to vector<8x64xf32>
    %21 = arith.mulf %16, %20 : vector<8x64xf32>
    %22 = vector.broadcast %2 : vector<1x64xf32> to vector<8x64xf32>
    %23 = arith.mulf %21, %22 : vector<8x64xf32>
    %24 = vector.broadcast %3 : vector<1x64xf32> to vector<8x64xf32>
    %25 = arith.addf %23, %24 : vector<8x64xf32>
    %26 = arith.truncf %25 : vector<8x64xf32> to vector<8x64xbf16>
    %c0_10 = arith.constant 0 : index
    %c0_11 = arith.constant 0 : index
    %c0_12 = arith.constant 0 : index
    %27 = vector.load %arg2[%c0_10, %c0_11, %c0_12] : memref<1x1x8xf32, #tpu.memory_space<vmem>>, vector<1x1x8xf32>
    %28 = vector.shape_cast %27 : vector<1x1x8xf32> to vector<1x1x8xf32>
    %29 = vector.broadcast %28 : vector<1x1x8xf32> to vector<2x8x8xf32>
    %c0_13 = arith.constant 0 : index
    %c0_14 = arith.constant 0 : index
    %c0_15 = arith.constant 0 : index
    %30 = vector.load %arg5[%c0_13, %c0_14, %c0_15] : memref<2x64x384xbf16, #tpu.memory_space<vmem>>, vector<1x64x384xbf16>
    %31 = vector.shape_cast %30 : vector<1x64x384xbf16> to vector<64x384xbf16>
    %c0_16 = arith.constant 0 : index
    %c0_17 = arith.constant 0 : index
    %c0_18 = arith.constant 0 : index
    %32 = vector.load %arg6[%c0_16, %c0_17, %c0_18] : memref<2x1x384xf32, #tpu.memory_space<vmem>>, vector<1x1x384xf32>
    %33 = vector.shape_cast %32 : vector<1x1x384xf32> to vector<1x384xf32>
    %cst_19 = arith.constant dense<0.000000e+00> : vector<8x384xf32>
    %34 = tpu.matmul %26, %31, %cst_19 {dimension_numbers = #tpu.dot_dimension_numbers<[1], [0], [0], [1], [0, 0, 1, 1], [], []>} : vector<8x64xbf16>, vector<64x384xbf16>, vector<8x384xf32> -> vector<8x384xf32>
    %35 = vector.broadcast %33 : vector<1x384xf32> to vector<8x384xf32>
    %36 = arith.addf %34, %35 : vector<8x384xf32>
    %37 = arith.truncf %36 : vector<8x384xf32> to vector<8x384xbf16>
    %38 = vector.extract_strided_slice %37 {offsets = [0, 0], sizes = [8, 64], strides = [1, 1]} : vector<8x384xbf16> to vector<8x64xbf16>
    %39 = vector.shape_cast %38 : vector<8x64xbf16> to vector<8x2x32xbf16>
    %40 = vector.extract_strided_slice %37 {offsets = [0, 128], sizes = [8, 64], strides = [1, 1]} : vector<8x384xbf16> to vector<8x64xbf16>
    %41 = vector.shape_cast %40 : vector<8x64xbf16> to vector<8x2x32xbf16>
    %42 = vector.extract_strided_slice %37 {offsets = [0, 256], sizes = [8, 64], strides = [1, 1]} : vector<8x384xbf16> to vector<8x64xbf16>
    %43 = vector.shape_cast %42 : vector<8x64xbf16> to vector<8x2x32xbf16>
    "tpu.trace_start"() <{level = 10 : i32, message = "qhd,khd->hqk"}> : () -> ()
    %cst_20 = arith.constant dense<0.000000e+00> : vector<2x8x8xf32>
    %44 = tpu.matmul %39, %41, %cst_20 {dimension_numbers = #tpu.dot_dimension_numbers<[2], [2], [0], [0], [0, 1, 0, 0, 1, 0], [1], [1]>} : vector<8x2x32xbf16>, vector<8x2x32xbf16>, vector<2x8x8xf32> -> vector<2x8x8xf32>
    "tpu.trace_stop"() : () -> ()
    %45 = arith.addf %44, %29 : vector<2x8x8xf32>
    %cst_21 = arith.constant dense<0xFF800000> : vector<2x8xf32>
    %46 = vector.multi_reduction <maximumf>, %45, %cst_21 [2] : vector<2x8x8xf32> to vector<2x8xf32>
    %47 = vector.shape_cast %46 : vector<2x8xf32> to vector<2x8x1xf32>
    %48 = vector.broadcast %47 : vector<2x8x1xf32> to vector<2x8x8xf32>
    %49 = arith.subf %45, %48 : vector<2x8x8xf32>
    %50 = math.exp %49 : vector<2x8x8xf32>
    %cst_22 = arith.constant dense<0.000000e+00> : vector<2x8xf32>
    %51 = vector.multi_reduction <add>, %50, %cst_22 [2] : vector<2x8x8xf32> to vector<2x8xf32>
    %52 = vector.shape_cast %51 : vector<2x8xf32> to vector<2x8x1xf32>
    %53 = tpu.reciprocal %52 {approx = true} : vector<2x8x1xf32> -> vector<2x8x1xf32>
    %54 = vector.broadcast %53 : vector<2x8x1xf32> to vector<2x8x8xf32>
    %55 = arith.mulf %50, %54 : vector<2x8x8xf32>
    %56 = arith.truncf %55 : vector<2x8x8xf32> to vector<2x8x8xbf16>
    "tpu.trace_start"() <{level = 10 : i32, message = "hqk,khd->qhd"}> : () -> ()
    %cst_23 = arith.constant dense<0.000000e+00> : vector<2x32x8xf32>
    %57 = tpu.matmul %43, %56, %cst_23 {dimension_numbers = #tpu.dot_dimension_numbers<[0], [2], [2], [1], [0, 1, 0, 2, 1, 1], [1], [0]>} : vector<8x2x32xbf16>, vector<2x8x8xbf16>, vector<2x32x8xf32> -> vector<2x32x8xf32>
    %58 = tpu.transpose %57, [2, 0, 1] : vector<2x32x8xf32> -> vector<8x2x32xf32>
    "tpu.trace_stop"() : () -> ()
    %59 = vector.shape_cast %58 : vector<8x2x32xf32> to vector<8x64xf32>
    %c0_24 = arith.constant 0 : index
    %c0_25 = arith.constant 0 : index
    %c0_26 = arith.constant 0 : index
    %60 = vector.load %arg7[%c0_24, %c0_25, %c0_26] : memref<2x64x64xbf16, #tpu.memory_space<vmem>>, vector<1x64x64xbf16>
    %61 = vector.shape_cast %60 : vector<1x64x64xbf16> to vector<64x64xbf16>
    %c0_27 = arith.constant 0 : index
    %c0_28 = arith.constant 0 : index
    %c0_29 = arith.constant 0 : index
    %62 = vector.load %arg8[%c0_27, %c0_28, %c0_29] : memref<2x1x64xf32, #tpu.memory_space<vmem>>, vector<1x1x64xf32>
    %63 = vector.shape_cast %62 : vector<1x1x64xf32> to vector<1x64xf32>
    %64 = arith.truncf %59 : vector<8x64xf32> to vector<8x64xbf16>
    %cst_30 = arith.constant dense<0.000000e+00> : vector<8x64xf32>
    %65 = tpu.matmul %64, %61, %cst_30 {dimension_numbers = #tpu.dot_dimension_numbers<[1], [0], [0], [1], [0, 0, 1, 1], [], []>} : vector<8x64xbf16>, vector<64x64xbf16>, vector<8x64xf32> -> vector<8x64xf32>
    %66 = vector.broadcast %63 : vector<1x64xf32> to vector<8x64xf32>
    %67 = arith.addf %65, %66 : vector<8x64xf32>
    %68 = arith.extf %26 : vector<8x64xbf16> to vector<8x64xf32>
    %69 = arith.addf %67, %68 : vector<8x64xf32>
    %c0_31 = arith.constant 0 : index
    %c0_32 = arith.constant 0 : index
    %c0_33 = arith.constant 0 : index
    %70 = vector.load %arg9[%c0_31, %c0_32, %c0_33] : memref<2x1x64xf32, #tpu.memory_space<vmem>>, vector<1x1x64xf32>
    %71 = vector.shape_cast %70 : vector<1x1x64xf32> to vector<1x64xf32>
    %c0_34 = arith.constant 0 : index
    %c0_35 = arith.constant 0 : index
    %c0_36 = arith.constant 0 : index
    %72 = vector.load %arg10[%c0_34, %c0_35, %c0_36] : memref<2x1x64xf32, #tpu.memory_space<vmem>>, vector<1x1x64xf32>
    %73 = vector.shape_cast %72 : vector<1x1x64xf32> to vector<1x64xf32>
    %cst_37 = arith.constant dense<0.000000e+00> : vector<8xf32>
    %74 = vector.multi_reduction <add>, %69, %cst_37 [1] : vector<8x64xf32> to vector<8xf32>
    %75 = vector.shape_cast %74 : vector<8xf32> to vector<8x1xf32>
    %cst_38 = arith.constant 6.400000e+01 : f32
    %76 = vector.broadcast %cst_38 : f32 to vector<8x1xf32>
    %77 = arith.divf %75, %76 : vector<8x1xf32>
    %78 = vector.broadcast %77 : vector<8x1xf32> to vector<8x64xf32>
    %79 = arith.subf %69, %78 : vector<8x64xf32>
    %80 = arith.mulf %79, %79 : vector<8x64xf32>
    %cst_39 = arith.constant dense<0.000000e+00> : vector<8xf32>
    %81 = vector.multi_reduction <add>, %80, %cst_39 [1] : vector<8x64xf32> to vector<8xf32>
    %82 = vector.shape_cast %81 : vector<8xf32> to vector<8x1xf32>
    %cst_40 = arith.constant 6.400000e+01 : f32
    %83 = vector.broadcast %cst_40 : f32 to vector<8x1xf32>
    %84 = arith.divf %82, %83 : vector<8x1xf32>
    %85 = vector.broadcast %77 : vector<8x1xf32> to vector<8x64xf32>
    %86 = arith.subf %69, %85 : vector<8x64xf32>
    %cst_41 = arith.constant 9.99999996E-13 : f32
    %87 = vector.broadcast %cst_41 : f32 to vector<8x1xf32>
    %88 = arith.addf %84, %87 : vector<8x1xf32>
    %89 = math.rsqrt %88 : vector<8x1xf32>
    %90 = vector.broadcast %89 : vector<8x1xf32> to vector<8x64xf32>
    %91 = arith.mulf %86, %90 : vector<8x64xf32>
    %92 = vector.broadcast %71 : vector<1x64xf32> to vector<8x64xf32>
    %93 = arith.mulf %91, %92 : vector<8x64xf32>
    %94 = vector.broadcast %73 : vector<1x64xf32> to vector<8x64xf32>
    %95 = arith.addf %93, %94 : vector<8x64xf32>
    %96 = arith.truncf %95 : vector<8x64xf32> to vector<8x64xbf16>
    %c0_42 = arith.constant 0 : index
    %c0_43 = arith.constant 0 : index
    %c0_44 = arith.constant 0 : index
    %97 = vector.load %arg11[%c0_42, %c0_43, %c0_44] : memref<2x64x128xbf16, #tpu.memory_space<vmem>>, vector<1x64x128xbf16>
    %98 = vector.shape_cast %97 : vector<1x64x128xbf16> to vector<64x128xbf16>
    %c0_45 = arith.constant 0 : index
    %c0_46 = arith.constant 0 : index
    %c0_47 = arith.constant 0 : index
    %99 = vector.load %arg12[%c0_45, %c0_46, %c0_47] : memref<2x1x128xf32, #tpu.memory_space<vmem>>, vector<1x1x128xf32>
    %100 = vector.shape_cast %99 : vector<1x1x128xf32> to vector<1x128xf32>
    %cst_48 = arith.constant dense<0.000000e+00> : vector<8x128xf32>
    %101 = tpu.matmul %96, %98, %cst_48 {dimension_numbers = #tpu.dot_dimension_numbers<[1], [0], [0], [1], [0, 0, 1, 1], [], []>} : vector<8x64xbf16>, vector<64x128xbf16>, vector<8x128xf32> -> vector<8x128xf32>
    %102 = vector.broadcast %100 : vector<1x128xf32> to vector<8x128xf32>
    %103 = arith.addf %101, %102 : vector<8x128xf32>
    %104 = arith.mulf %103, %103 : vector<8x128xf32>
    %105 = arith.mulf %103, %104 : vector<8x128xf32>
    %cst_49 = arith.constant 4.471500e-02 : f32
    %106 = vector.broadcast %cst_49 : f32 to vector<8x128xf32>
    %107 = arith.mulf %106, %105 : vector<8x128xf32>
    %108 = arith.addf %103, %107 : vector<8x128xf32>
    %cst_50 = arith.constant 0.797884583 : f32
    %109 = vector.broadcast %cst_50 : f32 to vector<8x128xf32>
    %110 = arith.mulf %109, %108 : vector<8x128xf32>
    %111 = math.tanh %110 : vector<8x128xf32>
    %cst_51 = arith.constant 1.000000e+00 : f32
    %112 = vector.broadcast %cst_51 : f32 to vector<8x128xf32>
    %113 = arith.addf %112, %111 : vector<8x128xf32>
    %cst_52 = arith.constant 5.000000e-01 : f32
    %114 = vector.broadcast %cst_52 : f32 to vector<8x128xf32>
    %115 = arith.mulf %114, %113 : vector<8x128xf32>
    %116 = arith.mulf %103, %115 : vector<8x128xf32>
    %c0_53 = arith.constant 0 : index
    %c0_54 = arith.constant 0 : index
    %c0_55 = arith.constant 0 : index
    %117 = vector.load %arg13[%c0_53, %c0_54, %c0_55] : memref<2x128x64xbf16, #tpu.memory_space<vmem>>, vector<1x128x64xbf16>
    %118 = vector.shape_cast %117 : vector<1x128x64xbf16> to vector<128x64xbf16>
    %c0_56 = arith.constant 0 : index
    %c0_57 = arith.constant 0 : index
    %c0_58 = arith.constant 0 : index
    %119 = vector.load %arg14[%c0_56, %c0_57, %c0_58] : memref<2x1x64xf32, #tpu.memory_space<vmem>>, vector<1x1x64xf32>
    %120 = vector.shape_cast %119 : vector<1x1x64xf32> to vector<1x64xf32>
    %121 = arith.truncf %116 : vector<8x128xf32> to vector<8x128xbf16>
    %cst_59 = arith.constant dense<0.000000e+00> : vector<8x64xf32>
    %122 = tpu.matmul %121, %118, %cst_59 {dimension_numbers = #tpu.dot_dimension_numbers<[1], [0], [0], [1], [0, 0, 1, 1], [], []>} : vector<8x128xbf16>, vector<128x64xbf16>, vector<8x64xf32> -> vector<8x64xf32>
    %123 = vector.broadcast %120 : vector<1x64xf32> to vector<8x64xf32>
    %124 = arith.addf %122, %123 : vector<8x64xf32>
    %125 = arith.extf %96 : vector<8x64xbf16> to vector<8x64xf32>
    %126 = arith.addf %124, %125 : vector<8x64xf32>
    %c0_60 = arith.constant 0 : index
    %c0_61 = arith.constant 0 : index
    %c0_62 = arith.constant 0 : index
    %127 = vector.load %arg15[%c0_60, %c0_61, %c0_62] : memref<2x1x64xf32, #tpu.memory_space<vmem>>, vector<1x1x64xf32>
    %128 = vector.shape_cast %127 : vector<1x1x64xf32> to vector<1x64xf32>
    %c0_63 = arith.constant 0 : index
    %c0_64 = arith.constant 0 : index
    %c0_65 = arith.constant 0 : index
    %129 = vector.load %arg16[%c0_63, %c0_64, %c0_65] : memref<2x1x64xf32, #tpu.memory_space<vmem>>, vector<1x1x64xf32>
    %130 = vector.shape_cast %129 : vector<1x1x64xf32> to vector<1x64xf32>
    %cst_66 = arith.constant dense<0.000000e+00> : vector<8xf32>
    %131 = vector.multi_reduction <add>, %126, %cst_66 [1] : vector<8x64xf32> to vector<8xf32>
    %132 = vector.shape_cast %131 : vector<8xf32> to vector<8x1xf32>
    %cst_67 = arith.constant 6.400000e+01 : f32
    %133 = vector.broadcast %cst_67 : f32 to vector<8x1xf32>
    %134 = arith.divf %132, %133 : vector<8x1xf32>
    %135 = vector.broadcast %134 : vector<8x1xf32> to vector<8x64xf32>
    %136 = arith.subf %126, %135 : vector<8x64xf32>
    %137 = arith.mulf %136, %136 : vector<8x64xf32>
    %cst_68 = arith.constant dense<0.000000e+00> : vector<8xf32>
    %138 = vector.multi_reduction <add>, %137, %cst_68 [1] : vector<8x64xf32> to vector<8xf32>
    %139 = vector.shape_cast %138 : vector<8xf32> to vector<8x1xf32>
    %cst_69 = arith.constant 6.400000e+01 : f32
    %140 = vector.broadcast %cst_69 : f32 to vector<8x1xf32>
    %141 = arith.divf %139, %140 : vector<8x1xf32>
    %142 = vector.broadcast %134 : vector<8x1xf32> to vector<8x64xf32>
    %143 = arith.subf %126, %142 : vector<8x64xf32>
    %cst_70 = arith.constant 9.99999996E-13 : f32
    %144 = vector.broadcast %cst_70 : f32 to vector<8x1xf32>
    %145 = arith.addf %141, %144 : vector<8x1xf32>
    %146 = math.rsqrt %145 : vector<8x1xf32>
    %147 = vector.broadcast %146 : vector<8x1xf32> to vector<8x64xf32>
    %148 = arith.mulf %143, %147 : vector<8x64xf32>
    %149 = vector.broadcast %128 : vector<1x64xf32> to vector<8x64xf32>
    %150 = arith.mulf %148, %149 : vector<8x64xf32>
    %151 = vector.broadcast %130 : vector<1x64xf32> to vector<8x64xf32>
    %152 = arith.addf %150, %151 : vector<8x64xf32>
    %153 = arith.truncf %152 : vector<8x64xf32> to vector<8x64xbf16>
    %c1 = arith.constant 1 : index
    %c0_71 = arith.constant 0 : index
    %c0_72 = arith.constant 0 : index
    %154 = vector.load %arg5[%c1, %c0_71, %c0_72] : memref<2x64x384xbf16, #tpu.memory_space<vmem>>, vector<1x64x384xbf16>
    %155 = vector.shape_cast %154 : vector<1x64x384xbf16> to vector<64x384xbf16>
    %c1_73 = arith.constant 1 : index
    %c0_74 = arith.constant 0 : index
    %c0_75 = arith.constant 0 : index
    %156 = vector.load %arg6[%c1_73, %c0_74, %c0_75] : memref<2x1x384xf32, #tpu.memory_space<vmem>>, vector<1x1x384xf32>
    %157 = vector.shape_cast %156 : vector<1x1x384xf32> to vector<1x384xf32>
    %cst_76 = arith.constant dense<0.000000e+00> : vector<8x384xf32>
    %158 = tpu.matmul %153, %155, %cst_76 {dimension_numbers = #tpu.dot_dimension_numbers<[1], [0], [0], [1], [0, 0, 1, 1], [], []>} : vector<8x64xbf16>, vector<64x384xbf16>, vector<8x384xf32> -> vector<8x384xf32>
    %159 = vector.broadcast %157 : vector<1x384xf32> to vector<8x384xf32>
    %160 = arith.addf %158, %159 : vector<8x384xf32>
    %161 = arith.truncf %160 : vector<8x384xf32> to vector<8x384xbf16>
    %162 = vector.extract_strided_slice %161 {offsets = [0, 0], sizes = [8, 64], strides = [1, 1]} : vector<8x384xbf16> to vector<8x64xbf16>
    %163 = vector.shape_cast %162 : vector<8x64xbf16> to vector<8x2x32xbf16>
    %164 = vector.extract_strided_slice %161 {offsets = [0, 128], sizes = [8, 64], strides = [1, 1]} : vector<8x384xbf16> to vector<8x64xbf16>
    %165 = vector.shape_cast %164 : vector<8x64xbf16> to vector<8x2x32xbf16>
    %166 = vector.extract_strided_slice %161 {offsets = [0, 256], sizes = [8, 64], strides = [1, 1]} : vector<8x384xbf16> to vector<8x64xbf16>
    %167 = vector.shape_cast %166 : vector<8x64xbf16> to vector<8x2x32xbf16>
    "tpu.trace_start"() <{level = 10 : i32, message = "qhd,khd->hqk"}> : () -> ()
    %cst_77 = arith.constant dense<0.000000e+00> : vector<2x8x8xf32>
    %168 = tpu.matmul %163, %165, %cst_77 {dimension_numbers = #tpu.dot_dimension_numbers<[2], [2], [0], [0], [0, 1, 0, 0, 1, 0], [1], [1]>} : vector<8x2x32xbf16>, vector<8x2x32xbf16>, vector<2x8x8xf32> -> vector<2x8x8xf32>
    "tpu.trace_stop"() : () -> ()
    %169 = arith.addf %168, %29 : vector<2x8x8xf32>
    %cst_78 = arith.constant dense<0xFF800000> : vector<2x8xf32>
    %170 = vector.multi_reduction <maximumf>, %169, %cst_78 [2] : vector<2x8x8xf32> to vector<2x8xf32>
    %171 = vector.shape_cast %170 : vector<2x8xf32> to vector<2x8x1xf32>
    %172 = vector.broadcast %171 : vector<2x8x1xf32> to vector<2x8x8xf32>
    %173 = arith.subf %169, %172 : vector<2x8x8xf32>
    %174 = math.exp %173 : vector<2x8x8xf32>
    %cst_79 = arith.constant dense<0.000000e+00> : vector<2x8xf32>
    %175 = vector.multi_reduction <add>, %174, %cst_79 [2] : vector<2x8x8xf32> to vector<2x8xf32>
    %176 = vector.shape_cast %175 : vector<2x8xf32> to vector<2x8x1xf32>
    %177 = tpu.reciprocal %176 {approx = true} : vector<2x8x1xf32> -> vector<2x8x1xf32>
    %178 = vector.broadcast %177 : vector<2x8x1xf32> to vector<2x8x8xf32>
    %179 = arith.mulf %174, %178 : vector<2x8x8xf32>
    %180 = arith.truncf %179 : vector<2x8x8xf32> to vector<2x8x8xbf16>
    "tpu.trace_start"() <{level = 10 : i32, message = "hqk,khd->qhd"}> : () -> ()
    %cst_80 = arith.constant dense<0.000000e+00> : vector<2x32x8xf32>
    %181 = tpu.matmul %167, %180, %cst_80 {dimension_numbers = #tpu.dot_dimension_numbers<[0], [2], [2], [1], [0, 1, 0, 2, 1, 1], [1], [0]>} : vector<8x2x32xbf16>, vector<2x8x8xbf16>, vector<2x32x8xf32> -> vector<2x32x8xf32>
    %182 = tpu.transpose %181, [2, 0, 1] : vector<2x32x8xf32> -> vector<8x2x32xf32>
    "tpu.trace_stop"() : () -> ()
    %183 = vector.shape_cast %182 : vector<8x2x32xf32> to vector<8x64xf32>
    %c1_81 = arith.constant 1 : index
    %c0_82 = arith.constant 0 : index
    %c0_83 = arith.constant 0 : index
    %184 = vector.load %arg7[%c1_81, %c0_82, %c0_83] : memref<2x64x64xbf16, #tpu.memory_space<vmem>>, vector<1x64x64xbf16>
    %185 = vector.shape_cast %184 : vector<1x64x64xbf16> to vector<64x64xbf16>
    %c1_84 = arith.constant 1 : index
    %c0_85 = arith.constant 0 : index
    %c0_86 = arith.constant 0 : index
    %186 = vector.load %arg8[%c1_84, %c0_85, %c0_86] : memref<2x1x64xf32, #tpu.memory_space<vmem>>, vector<1x1x64xf32>
    %187 = vector.shape_cast %186 : vector<1x1x64xf32> to vector<1x64xf32>
    %188 = arith.truncf %183 : vector<8x64xf32> to vector<8x64xbf16>
    %cst_87 = arith.constant dense<0.000000e+00> : vector<8x64xf32>
    %189 = tpu.matmul %188, %185, %cst_87 {dimension_numbers = #tpu.dot_dimension_numbers<[1], [0], [0], [1], [0, 0, 1, 1], [], []>} : vector<8x64xbf16>, vector<64x64xbf16>, vector<8x64xf32> -> vector<8x64xf32>
    %190 = vector.broadcast %187 : vector<1x64xf32> to vector<8x64xf32>
    %191 = arith.addf %189, %190 : vector<8x64xf32>
    %192 = arith.extf %153 : vector<8x64xbf16> to vector<8x64xf32>
    %193 = arith.addf %191, %192 : vector<8x64xf32>
    %c1_88 = arith.constant 1 : index
    %c0_89 = arith.constant 0 : index
    %c0_90 = arith.constant 0 : index
    %194 = vector.load %arg9[%c1_88, %c0_89, %c0_90] : memref<2x1x64xf32, #tpu.memory_space<vmem>>, vector<1x1x64xf32>
    %195 = vector.shape_cast %194 : vector<1x1x64xf32> to vector<1x64xf32>
    %c1_91 = arith.constant 1 : index
    %c0_92 = arith.constant 0 : index
    %c0_93 = arith.constant 0 : index
    %196 = vector.load %arg10[%c1_91, %c0_92, %c0_93] : memref<2x1x64xf32, #tpu.memory_space<vmem>>, vector<1x1x64xf32>
    %197 = vector.shape_cast %196 : vector<1x1x64xf32> to vector<1x64xf32>
    %cst_94 = arith.constant dense<0.000000e+00> : vector<8xf32>
    %198 = vector.multi_reduction <add>, %193, %cst_94 [1] : vector<8x64xf32> to vector<8xf32>
    %199 = vector.shape_cast %198 : vector<8xf32> to vector<8x1xf32>
    %cst_95 = arith.constant 6.400000e+01 : f32
    %200 = vector.broadcast %cst_95 : f32 to vector<8x1xf32>
    %201 = arith.divf %199, %200 : vector<8x1xf32>
    %202 = vector.broadcast %201 : vector<8x1xf32> to vector<8x64xf32>
    %203 = arith.subf %193, %202 : vector<8x64xf32>
    %204 = arith.mulf %203, %203 : vector<8x64xf32>
    %cst_96 = arith.constant dense<0.000000e+00> : vector<8xf32>
    %205 = vector.multi_reduction <add>, %204, %cst_96 [1] : vector<8x64xf32> to vector<8xf32>
    %206 = vector.shape_cast %205 : vector<8xf32> to vector<8x1xf32>
    %cst_97 = arith.constant 6.400000e+01 : f32
    %207 = vector.broadcast %cst_97 : f32 to vector<8x1xf32>
    %208 = arith.divf %206, %207 : vector<8x1xf32>
    %209 = vector.broadcast %201 : vector<8x1xf32> to vector<8x64xf32>
    %210 = arith.subf %193, %209 : vector<8x64xf32>
    %cst_98 = arith.constant 9.99999996E-13 : f32
    %211 = vector.broadcast %cst_98 : f32 to vector<8x1xf32>
    %212 = arith.addf %208, %211 : vector<8x1xf32>
    %213 = math.rsqrt %212 : vector<8x1xf32>
    %214 = vector.broadcast %213 : vector<8x1xf32> to vector<8x64xf32>
    %215 = arith.mulf %210, %214 : vector<8x64xf32>
    %216 = vector.broadcast %195 : vector<1x64xf32> to vector<8x64xf32>
    %217 = arith.mulf %215, %216 : vector<8x64xf32>
    %218 = vector.broadcast %197 : vector<1x64xf32> to vector<8x64xf32>
    %219 = arith.addf %217, %218 : vector<8x64xf32>
    %220 = arith.truncf %219 : vector<8x64xf32> to vector<8x64xbf16>
    %c1_99 = arith.constant 1 : index
    %c0_100 = arith.constant 0 : index
    %c0_101 = arith.constant 0 : index
    %221 = vector.load %arg11[%c1_99, %c0_100, %c0_101] : memref<2x64x128xbf16, #tpu.memory_space<vmem>>, vector<1x64x128xbf16>
    %222 = vector.shape_cast %221 : vector<1x64x128xbf16> to vector<64x128xbf16>
    %c1_102 = arith.constant 1 : index
    %c0_103 = arith.constant 0 : index
    %c0_104 = arith.constant 0 : index
    %223 = vector.load %arg12[%c1_102, %c0_103, %c0_104] : memref<2x1x128xf32, #tpu.memory_space<vmem>>, vector<1x1x128xf32>
    %224 = vector.shape_cast %223 : vector<1x1x128xf32> to vector<1x128xf32>
    %cst_105 = arith.constant dense<0.000000e+00> : vector<8x128xf32>
    %225 = tpu.matmul %220, %222, %cst_105 {dimension_numbers = #tpu.dot_dimension_numbers<[1], [0], [0], [1], [0, 0, 1, 1], [], []>} : vector<8x64xbf16>, vector<64x128xbf16>, vector<8x128xf32> -> vector<8x128xf32>
    %226 = vector.broadcast %224 : vector<1x128xf32> to vector<8x128xf32>
    %227 = arith.addf %225, %226 : vector<8x128xf32>
    %228 = arith.mulf %227, %227 : vector<8x128xf32>
    %229 = arith.mulf %227, %228 : vector<8x128xf32>
    %cst_106 = arith.constant 4.471500e-02 : f32
    %230 = vector.broadcast %cst_106 : f32 to vector<8x128xf32>
    %231 = arith.mulf %230, %229 : vector<8x128xf32>
    %232 = arith.addf %227, %231 : vector<8x128xf32>
    %cst_107 = arith.constant 0.797884583 : f32
    %233 = vector.broadcast %cst_107 : f32 to vector<8x128xf32>
    %234 = arith.mulf %233, %232 : vector<8x128xf32>
    %235 = math.tanh %234 : vector<8x128xf32>
    %cst_108 = arith.constant 1.000000e+00 : f32
    %236 = vector.broadcast %cst_108 : f32 to vector<8x128xf32>
    %237 = arith.addf %236, %235 : vector<8x128xf32>
    %cst_109 = arith.constant 5.000000e-01 : f32
    %238 = vector.broadcast %cst_109 : f32 to vector<8x128xf32>
    %239 = arith.mulf %238, %237 : vector<8x128xf32>
    %240 = arith.mulf %227, %239 : vector<8x128xf32>
    %c1_110 = arith.constant 1 : index
    %c0_111 = arith.constant 0 : index
    %c0_112 = arith.constant 0 : index
    %241 = vector.load %arg13[%c1_110, %c0_111, %c0_112] : memref<2x128x64xbf16, #tpu.memory_space<vmem>>, vector<1x128x64xbf16>
    %242 = vector.shape_cast %241 : vector<1x128x64xbf16> to vector<128x64xbf16>
    %c1_113 = arith.constant 1 : index
    %c0_114 = arith.constant 0 : index
    %c0_115 = arith.constant 0 : index
    %243 = vector.load %arg14[%c1_113, %c0_114, %c0_115] : memref<2x1x64xf32, #tpu.memory_space<vmem>>, vector<1x1x64xf32>
    %244 = vector.shape_cast %243 : vector<1x1x64xf32> to vector<1x64xf32>
    %245 = arith.truncf %240 : vector<8x128xf32> to vector<8x128xbf16>
    %cst_116 = arith.constant dense<0.000000e+00> : vector<8x64xf32>
    %246 = tpu.matmul %245, %242, %cst_116 {dimension_numbers = #tpu.dot_dimension_numbers<[1], [0], [0], [1], [0, 0, 1, 1], [], []>} : vector<8x128xbf16>, vector<128x64xbf16>, vector<8x64xf32> -> vector<8x64xf32>
    %247 = vector.broadcast %244 : vector<1x64xf32> to vector<8x64xf32>
    %248 = arith.addf %246, %247 : vector<8x64xf32>
    %249 = arith.extf %220 : vector<8x64xbf16> to vector<8x64xf32>
    %250 = arith.addf %248, %249 : vector<8x64xf32>
    %c1_117 = arith.constant 1 : index
    %c0_118 = arith.constant 0 : index
    %c0_119 = arith.constant 0 : index
    %251 = vector.load %arg15[%c1_117, %c0_118, %c0_119] : memref<2x1x64xf32, #tpu.memory_space<vmem>>, vector<1x1x64xf32>
    %252 = vector.shape_cast %251 : vector<1x1x64xf32> to vector<1x64xf32>
    %c1_120 = arith.constant 1 : index
    %c0_121 = arith.constant 0 : index
    %c0_122 = arith.constant 0 : index
    %253 = vector.load %arg16[%c1_120, %c0_121, %c0_122] : memref<2x1x64xf32, #tpu.memory_space<vmem>>, vector<1x1x64xf32>
    %254 = vector.shape_cast %253 : vector<1x1x64xf32> to vector<1x64xf32>
    %cst_123 = arith.constant dense<0.000000e+00> : vector<8xf32>
    %255 = vector.multi_reduction <add>, %250, %cst_123 [1] : vector<8x64xf32> to vector<8xf32>
    %256 = vector.shape_cast %255 : vector<8xf32> to vector<8x1xf32>
    %cst_124 = arith.constant 6.400000e+01 : f32
    %257 = vector.broadcast %cst_124 : f32 to vector<8x1xf32>
    %258 = arith.divf %256, %257 : vector<8x1xf32>
    %259 = vector.broadcast %258 : vector<8x1xf32> to vector<8x64xf32>
    %260 = arith.subf %250, %259 : vector<8x64xf32>
    %261 = arith.mulf %260, %260 : vector<8x64xf32>
    %cst_125 = arith.constant dense<0.000000e+00> : vector<8xf32>
    %262 = vector.multi_reduction <add>, %261, %cst_125 [1] : vector<8x64xf32> to vector<8xf32>
    %263 = vector.shape_cast %262 : vector<8xf32> to vector<8x1xf32>
    %cst_126 = arith.constant 6.400000e+01 : f32
    %264 = vector.broadcast %cst_126 : f32 to vector<8x1xf32>
    %265 = arith.divf %263, %264 : vector<8x1xf32>
    %266 = vector.broadcast %258 : vector<8x1xf32> to vector<8x64xf32>
    %267 = arith.subf %250, %266 : vector<8x64xf32>
    %cst_127 = arith.constant 9.99999996E-13 : f32
    %268 = vector.broadcast %cst_127 : f32 to vector<8x1xf32>
    %269 = arith.addf %265, %268 : vector<8x1xf32>
    %270 = math.rsqrt %269 : vector<8x1xf32>
    %271 = vector.broadcast %270 : vector<8x1xf32> to vector<8x64xf32>
    %272 = arith.mulf %267, %271 : vector<8x64xf32>
    %273 = vector.broadcast %252 : vector<1x64xf32> to vector<8x64xf32>
    %274 = arith.mulf %272, %273 : vector<8x64xf32>
    %275 = vector.broadcast %254 : vector<1x64xf32> to vector<8x64xf32>
    %276 = arith.addf %274, %275 : vector<8x64xf32>
    %277 = arith.truncf %276 : vector<8x64xf32> to vector<8x64xbf16>
    %278 = vector.extract_strided_slice %277 {offsets = [0, 0], sizes = [1, 64], strides = [1, 1]} : vector<8x64xbf16> to vector<1x64xbf16>
    %279 = arith.extf %278 : vector<1x64xbf16> to vector<1x64xf32>
    %280 = vector.shape_cast %279 : vector<1x64xf32> to vector<1x1x64xf32>
    %c0_128 = arith.constant 0 : index
    %c0_129 = arith.constant 0 : index
    %c0_130 = arith.constant 0 : index
    %281 = vector.load %arg17[%c0_128, %c0_129, %c0_130] : memref<1x1x64xf32, #tpu.memory_space<vmem>>, vector<1x1x64xf32>
    tpu.vector_store %arg17[%c0_128, %c0_129, %c0_130], %280 {strides = array<i32>} : memref<1x1x64xf32, #tpu.memory_space<vmem>>, vector<1x1x64xf32>,
    return
  }
  func.func @transform_0(%arg0: i32) -> (i32, i32, i32) {
    %c0_i32 = arith.constant 0 : i32
    %c0_i32_0 = arith.constant 0 : i32
    %c0_i32_1 = arith.constant 0 : i32
    return %arg0, %c0_i32, %c0_i32_0 : i32, i32, i32
  }
  func.func @transform_1(%arg0: i32) -> (i32, i32, i32) {
    %c0_i32 = arith.constant 0 : i32
    %c0_i32_0 = arith.constant 0 : i32
    %c0_i32_1 = arith.constant 0 : i32
    return %arg0, %c0_i32, %c0_i32_0 : i32, i32, i32
  }
  func.func @transform_2(%arg0: i32) -> (i32, i32) {
    %c0_i32 = arith.constant 0 : i32
    %c0_i32_0 = arith.constant 0 : i32
    %c0_i32_1 = arith.constant 0 : i32
    return %c0_i32, %c0_i32_0 : i32, i32
  }
  func.func @transform_3(%arg0: i32) -> (i32, i32) {
    %c0_i32 = arith.constant 0 : i32
    %c0_i32_0 = arith.constant 0 : i32
    %c0_i32_1 = arith.constant 0 : i32
    return %c0_i32, %c0_i32_0 : i32, i32
  }
  func.func @transform_4(%arg0: i32) -> (i32, i32, i32) {
    %c0_i32 = arith.constant 0 : i32
    %c0_i32_0 = arith.constant 0 : i32
    %c0_i32_1 = arith.constant 0 : i32
    %c0_i32_2 = arith.constant 0 : i32
    return %c0_i32, %c0_i32_0, %c0_i32_1 : i32, i32, i32
  }
  func.func @transform_5(%arg0: i32) -> (i32, i32, i32) {
    %c0_i32 = arith.constant 0 : i32
    %c0_i32_0 = arith.constant 0 : i32
    %c0_i32_1 = arith.constant 0 : i32
    %c0_i32_2 = arith.constant 0 : i32
    return %c0_i32, %c0_i32_0, %c0_i32_1 : i32, i32, i32
  }
  func.func @transform_6(%arg0: i32) -> (i32, i32, i32) {
    %c0_i32 = arith.constant 0 : i32
    %c0_i32_0 = arith.constant 0 : i32
    %c0_i32_1 = arith.constant 0 : i32
    %c0_i32_2 = arith.constant 0 : i32
    return %c0_i32, %c0_i32_0, %c0_i32_1 : i32, i32, i32
  }
  func.func @transform_7(%arg0: i32) -> (i32, i32, i32) {
    %c0_i32 = arith.constant 0 : i32
    %c0_i32_0 = arith.constant 0 : i32
    %c0_i32_1 = arith.constant 0 : i32
    %c0_i32_2 = arith.constant 0 : i32
    return %c0_i32, %c0_i32_0, %c0_i32_1 : i32, i32, i32
  }
  func.func @transform_8(%arg0: i32) -> (i32, i32, i32) {
    %c0_i32 = arith.constant 0 : i32
    %c0_i32_0 = arith.constant 0 : i32
    %c0_i32_1 = arith.constant 0 : i32
    %c0_i32_2 = arith.constant 0 : i32
    return %c0_i32, %c0_i32_0, %c0_i32_1 : i32, i32, i32
  }
  func.func @transform_9(%arg0: i32) -> (i32, i32, i32) {
    %c0_i32 = arith.constant 0 : i32
    %c0_i32_0 = arith.constant 0 : i32
    %c0_i32_1 = arith.constant 0 : i32
    %c0_i32_2 = arith.constant 0 : i32
    return %c0_i32, %c0_i32_0, %c0_i32_1 : i32, i32, i32
  }
  func.func @transform_10(%arg0: i32) -> (i32, i32, i32) {
    %c0_i32 = arith.constant 0 : i32
    %c0_i32_0 = arith.constant 0 : i32
    %c0_i32_1 = arith.constant 0 : i32
    %c0_i32_2 = arith.constant 0 : i32
    return %c0_i32, %c0_i32_0, %c0_i32_1 : i32, i32, i32
  }
  func.func @transform_11(%arg0: i32) -> (i32, i32, i32) {
    %c0_i32 = arith.constant 0 : i32
    %c0_i32_0 = arith.constant 0 : i32
    %c0_i32_1 = arith.constant 0 : i32
    %c0_i32_2 = arith.constant 0 : i32
    return %c0_i32, %c0_i32_0, %c0_i32_1 : i32, i32, i32
  }
  func.func @transform_12(%arg0: i32) -> (i32, i32, i32) {
    %c0_i32 = arith.constant 0 : i32
    %c0_i32_0 = arith.constant 0 : i32
    %c0_i32_1 = arith.constant 0 : i32
    %c0_i32_2 = arith.constant 0 : i32
    return %c0_i32, %c0_i32_0, %c0_i32_1 : i32, i32, i32
  }
  func.func @transform_13(%arg0: i32) -> (i32, i32, i32) {
    %c0_i32 = arith.constant 0 : i32
    %c0_i32_0 = arith.constant 0 : i32
    %c0_i32_1 = arith.constant 0 : i32
    %c0_i32_2 = arith.constant 0 : i32
    return %c0_i32, %c0_i32_0, %c0_i32_1 : i32, i32, i32
  }
  func.func @transform_14(%arg0: i32) -> (i32, i32, i32) {
    %c0_i32 = arith.constant 0 : i32
    %c0_i32_0 = arith.constant 0 : i32
    %c0_i32_1 = arith.constant 0 : i32
    %c0_i32_2 = arith.constant 0 : i32
    return %c0_i32, %c0_i32_0, %c0_i32_1 : i32, i32, i32
  }
  func.func @transform_15(%arg0: i32) -> (i32, i32, i32) {
    %c0_i32 = arith.constant 0 : i32
    %c0_i32_0 = arith.constant 0 : i32
    %c0_i32_1 = arith.constant 0 : i32
    %c0_i32_2 = arith.constant 0 : i32
    return %c0_i32, %c0_i32_0, %c0_i32_1 : i32, i32, i32
  }
  func.func @transform_16(%arg0: i32) -> (i32, i32, i32) {
    %c0_i32 = arith.constant 0 : i32
    %c0_i32_0 = arith.constant 0 : i32
    %c0_i32_1 = arith.constant 0 : i32
    return %arg0, %c0_i32, %c0_i32_0 : i32, i32, i32
  }
}

</mosaic_0001>

<bundles_post_ra>
// kernel: text_encoder_forward.1
= control target key start
LH: loop header
LB: loop body
LE: loop exit
PB: predicated region body
PF: predicated region fallthrough
CT: control target
= control target key end

     0   :  { %s3937_s0 = inlined_call_operand.vmem [shape: f32[2,8,64], index: 0, kind: input, shape index: {}]   ;;  %s3938_s1 = inlined_call_operand.vmem [shape: f32[2,1,8], index: 1, kind: input, shape index: {}]   ;;  %s3939_s2 = inlined_call_operand.vmem [shape: f32[1,64], index: 2, kind: input, shape index: {}]   ;;  %s3940_s3 = inlined_call_operand.vmem [shape: f32[1,64], index: 3, kind: input, shape index: {}]   ;;  %s3941_s4 = inlined_call_operand.vmem [shape: bf16[2,64,384], index: 4, kind: input, shape index: {}]   ;;  %s3942_s5 = inlined_call_operand.vmem [shape: f32[2,1,384], index: 5, kind: input, shape index: {}]   ;;  %s3943_s6 = inlined_call_operand.vmem [shape: bf16[2,64,64], index: 6, kind: input, shape index: {}]   ;;  %s3944_s7 = inlined_call_operand.vmem [shape: f32[2,1,64], index: 7, kind: input, shape index: {}]   ;;  %s3945_s8 = inlined_call_operand.vmem [shape: f32[2,1,64], index: 8, kind: input, shape index: {}]   ;;  %s3946_s9 = inlined_call_operand.vmem [shape: f32[2,1,64], index: 9, kind: input, shape index: {}]   ;;  %s3947_s10 = inlined_call_operand.vmem [shape: bf16[2,64,128], index: 10, kind: input, shape index: {}]   ;;  %s3948_s11 = inlined_call_operand.vmem [shape: f32[2,1,128], index: 11, kind: input, shape index: {}]   ;;  %s3949_s12 = inlined_call_operand.vmem [shape: bf16[2,128,64], index: 12, kind: input, shape index: {}]   ;;  %s3950_s13 = inlined_call_operand.vmem [shape: f32[2,1,64], index: 13, kind: input, shape index: {}]   ;;  %s3951_s14 = inlined_call_operand.vmem [shape: f32[2,1,64], index: 14, kind: input, shape index: {}]   ;;  %s3952_s15 = inlined_call_operand.vmem [shape: f32[2,1,64], index: 15, kind: input, shape index: {}]   ;;  %s3953_s16 = inlined_call_operand.hbm [shape: f32[2,1,64], index: 16, kind: output, shape index: {}]  }
   0x1   :  { %3961 = sst [smem:[#allocation9_spill]] %s3937_s0 }
   0x2   :  { %3962 = sst [smem:[#allocation10_spill]] %s3938_s1 }
   0x3   :  { %21 = vsyncpa [#allocation3], 0 }
   0x4   :  { %23 = vsyncpa [#allocation3 + $0x1], 0  ;;  %s3407_s21 = smov 0   ;;  %s3409_s22 = smov 0  }
   0x5   :  { %s3411_s23 = smov 0   ;;  %s3413_s24 = smov 0  }
   0x6 LB: > { %3963 = sst [smem:[#allocation5_spill]] %s3308_s23  ;;  %s3428_s25 = sadd.s32 4294967295, %s3312_s24   ;;  %s3312_s24 = sphi %s3413_s24, %s3974_s24   ;;  %s3308_s23 = sphi %s3411_s23, %s3976_s23   ;;  %s3304_s22 = sphi %s3409_s22, %s3978_s22   ;;  %s3300_s21 = sphi %s3407_s21, %s3977_s21  }
   0x7   : > { %s2705_s26 = sadd.s32 4294967294, %s3312_s24   ;;  %s3432_s27 = sadd.s32 1, %s3312_s24  }
   0x8   : > { %3964 = sst [smem:[#allocation6_spill]] %s3432_s27  ;;  %s382_s28 = sadd.s32 1, %s3308_s23 }
   0x9   : > { %s379_s29 = ssub.s32 %s3312_s24, %s3432_s27  ;;  %p392_p0 = scmp.ne.s32.totalorder %s3308_s23, %s3304_s22 }
   0xa   : > { %p380_p1 = scmp.eq.s32.totalorder %s379_s29, 0  ;;  %p393_p2 = scmp.eq.s32.totalorder %s3428_s25, 1 }
   0xb   : > { %p398_p3 = scmp.ne.s32.totalorder %s3304_s22, %s3300_s21  ;;  %p399_p4 = scmp.eq.s32.totalorder %s2705_s26, 1 }
   0xc   : > { %s3443_s30 = scalar_select %p380_p1, %s3308_s23, %s382_s28  }
   0xd   : > { %p3445_p5 = por %p393_p2, %p392_p0  ;;  %p3449_p6 = por %p399_p4, %p398_p3 }
   0xe   : > { %3965 = sst [smem:[#allocation7_spill]] %s3443_s30  ;;  %p2708_p7 = scmp.ge.s32.totalorder %s3312_s24, 1 }
   0xf   : > { %s3967_s17 = scalar_select %p3449_p6, 1, 0 }
  0x10   : > { %p472_p8 = scmp.lt.s32.totalorder %s3312_s24, 3 }
  0x11   : > { %3968 = sst [smem:[#allocation8_spill]] %s3967_s17 }
  0x12   : > { %p473_p9 = pnand %p2708_p7, %p472_p8 }
  0x13   : > { %p523_p10 = scmp.lt.s32.totalorder (!%p473_p9), %s3428_s25, 1  ;;  %vm534_vm0 = vcmask (!%p473_p9), 523264   ;;  %s3969_s28 = sld [smem:[#allocation9_spill]] (!%p473_p9)  ;;  %v3156_v7 = vld [vmem:[%s3941_s4 + $0x4] ss:$12 sps:$4 sm:$0xff] (!%p473_p9)   ;;  %v3314_v11 = vmov (!%p473_p9), 0   ;;  %v589_v31 = vlaneseq (!%p473_p9) }
  0x14   : > { %476 = sbr.rel (%p473_p9) target bundleno = 5889 (0x1701), region = 84  ;;  %v3158_v8 = vld [vmem:[%s3941_s4] ss:$12 sps:$4 sm:$0xff] (!%p473_p9)   ;;  %v3159_v9 = vld [vmem:[%s3941_s4 + $0x1c] ss:$12 sps:$4 sm:$0xff] (!%p473_p9)   ;;  %671 = vmatprep.subr.bf16.mxu1 (!%p473_p9), %v3156_v7  ;;  %703 = vmatprep.mubr.bf16.mxu1 (!%p473_p9), %v3314_v11  ;;  %v3315_v13 = vmov (!%p473_p9), 0.0  }
  0x15   : > { %672 = vmatpush1.bf16.msra.mxu1 (!%p473_p9), %v3158_v8  ;;  %v3161_v10 = vld [vmem:[%s3941_s4 + $0x18] ss:$12 sps:$4 sm:$0xff] (!%p473_p9)   ;;  %v3162_v12 = vld [vmem:[%s3941_s4 + $0x34] ss:$12 sps:$4 sm:$0xff] (!%p473_p9)   ;;  %2950 = vmatprep.subr.bf16.mxu0 (!%p473_p9), %v3315_v13  ;;  %v3164_v14 = vld [vmem:[%s3941_s4 + $0x30] ss:$12 sps:$4 sm:$0xff] (!%p473_p9)  }
  0x16   : > { %673 = vmatprep.subr.bf16.mxu1 (!%p473_p9), %v3159_v9  ;;  %v3165_v15 = vld [vmem:[%s3941_s4 + $0x4c] ss:$12 sps:$4 sm:$0xff] (!%p473_p9)   ;;  %v3167_v16 = vld [vmem:[%s3941_s4 + $0x48] ss:$12 sps:$4 sm:$0xff] (!%p473_p9)   ;;  %vm3316_vm1 = vmmov (!%p473_p9), 0   ;;  %v3526_v32 = vshrl.u32 (!%p473_p9), %v589_v31, 7 }
  0x17   : > { %2954 = vmatprep.mubr.msk.bf16.mxu0 (!%p473_p9), %vm3316_vm1, %v3315_v13  ;;  %v2710_v21 = vld [vmem:[%s3939_s2] ss:$0 sm:$0xff] (!%p473_p9)  ;;  %v3168_v26 = vld [vmem:[%s3941_s4 + $0x8] ss:$12 sps:$4 sm:$0xff] (!%p473_p9)   ;;  %v3170_v29 = vld [vmem:[%s3941_s4 + $0x38] ss:$12 sps:$4 sm:$0xff] (!%p473_p9)  }
  0x18   : > { %v2711_v23 = vld [vmem:[%s3940_s3] ss:$0 sm:$0xff] (!%p473_p9)  ;;  %v3171_v30 = vld [vmem:[%s3941_s4 + $0x50] ss:$12 sps:$4 sm:$0xff] (!%p473_p9)   ;;  %v595_v33 = vsub.s32 (!%p473_p9), 1, %v3526_v32  ;;  %v591_v35 = vsub.s32 (!%p473_p9), 0, %v3526_v32 }
  0x19   : > { %674 = vmatpush1.bf16.msra.mxu1 (!%p473_p9), %v3161_v10  ;;  %v3169_v28 = vld [vmem:[%s3941_s4 + $0x20] ss:$12 sps:$4 sm:$0xff] (!%p473_p9)   ;;  %vm798_vm2 = vcmask (!%p473_p9), 261120   ;;  %s3970_s1 = sld [smem:[#allocation10_spill]] (!%p473_p9)  ;;  %vm885_vm3 = vcmask (!%p473_p9), 64512   ;;  %v599_v63 = vsub.s32 (!%p473_p9), 2, %v3526_v32 }
  0x1a   : > { %675 = vmatprep.subr.bf16.mxu1 (!%p473_p9), %v3162_v12  ;;  %v587_v34 = vld [vmem:[%s3942_s5] sm:$0x7] (!%p473_p9)  ;;  %s3971_s23 = smov (!%p473_p9), 96   ;;  %vm2626_vm4 = vcmask (!%p473_p9), 516096  }
  0x1b   : > { %s3457_s18 = scalar_select %p523_p10, %s3428_s25, 1  ;;  %v596_v36 = vrot.slane %v587_v34, %v595_v33  ;;  %v592_v37 = vrot.slane %v587_v34, %v591_v35 }
  0x1d   : > { %s2709_s19 = sshll.u32 %s3457_s18, 3  ;;  %676 = vmatpush1.bf16.msra.mxu1 %v3164_v14 }
  0x1e   : > { %s526_s29 = scalar_lea.vmem %s3969_s28, %s2709_s19  ;;  %677 = vmatprep.subr.bf16.mxu1 %v3165_v15  ;;  %s3972_s28 = smov 32  }
  0x1f   : > { %v531_v0 = vld [vmem:[%s526_s29] sm:$0xff]  ;;  %s3959_s29 = smov 96   ;;  %s529_s26 = scalar_lea.vmem %s3970_s1, %s3457_s18 }
  0x20   : > { %v535_v1 = vsel %vm534_vm0, %v531_v0, 0.0  ;;  %v3547_v56 = vld [vmem:[%s529_s26] ss:$0 sm:$0xff]  ;;  %s3958_s26 = smov 32   ;;  %s521_s19 = sand.u32 1, %s3304_s22  }
  0x21   : > { %536 = vadd.xlane.f32.xlu0 %v535_v1  ;;  %678 = vmatpush1.bf16.msra.mxu1 %v3167_v16  ;;  %s2629_s20 = scalar_lea.sflag [#allocation3], %s521_s19 }
  0x22   : > { %2938 = vmatprep.subr.bf16.mxu1 %v3315_v13 }
  0xae   : > { %v537_v2 = vpop.xlane.xlu0 %536 }
  0xaf   : > { %v539_v3 = vmul.f32 0.015625, %v537_v2 }
  0xb1   : > { %v540_v4 = vsub.f32 %v531_v0, %v539_v3  ;;  %v600_v0 = vrot.slane %v587_v34, %v599_v63 }
  0xb3   : > { %v541_v5 = vmul.f32 %v540_v4, %v540_v4 }
  0xb5   : > { %v542_v6 = vsel %vm534_vm0, %v541_v5, 0.0 }
  0xb6   : > { %543 = vadd.xlane.f32.xlu0 %v542_v6 }
 0x143   : > { %v544_v17 = vpop.xlane.xlu0 %543 }
 0x144   : > { %v545_v18 = vmul.f32 0.015625, %v544_v17 }
 0x146   : > { %v546_v19 = vadd.f32 1e-12, %v545_v18 }
 0x148   : > { %3220 = vrsqrt.f32 %v546_v19 }
 0x152   : > { %v3221_v20 = vpop.eup %3220 }
 0x153   : > { %v548_v22 = vmul.f32 %v3221_v20, %v540_v4 }
 0x155   : > { %v555_v24 = vmul.f32 %v2710_v21, %v548_v22 }
 0x157   : > { %v562_v25 = vadd.f32 %v2711_v23, %v555_v24 }
 0x159   : > { %v3503_v27 = vpack.c.bf16 %v562_v25, %v562_v25 }
 0x15b   : > { %2725 = vmatmul.mubr.msk.bf16.vlgmr.msra.gmra.mrb[0].mxu1 %vm534_vm0, %v3503_v27 }
 0x15c   : > { %2939 = vmatpush3.bf16.msra.mxu1 %v3168_v26  ;;  %2946 = vmatprep.mubr.msk.bf16.mxu1 %vm3316_vm1, %v3315_v13 }
 0x15d   : > { %2940 = vmatprep.subr.bf16.mxu1 %v3315_v13 }
 0x160   : > { %2941 = vmatpush3.bf16.msra.mxu1 %v3169_v28 }
 0x161   : > { %2942 = vmatprep.subr.bf16.mxu1 %v3315_v13 }
 0x164   : > { %2943 = vmatpush3.bf16.msra.mxu1 %v3170_v29 }
 0x165   : > { %2944 = vmatprep.subr.bf16.mxu1 %v3315_v13 }
 0x168   : > { %2945 = vmatpush3.bf16.msra.mxu1 %v3171_v30 }
 0x169   : > { %2958 = vmatprep.subr.bf16.mxu1 %v3315_v13 }
 0x16b   : > { %2947 = vmatmul.mubr.msk.bf16.vlgmr.msra.gmra.mrb[4].mxu1 %vm534_vm0, %v3503_v27 }
 0x16c   : > { %2962 = vmatprep.mubr.msk.bf16.mxu1 %vm3316_vm1, %v3315_v13 }
 0x22e   : > { %v705_v38 = vpop.f32.mrb[0].mxu1 }
 0x22f   : > { %v707_v39 = vpop.f32.mrb[1].mxu1  ;;  %v706_v43 = vadd.f32 %v705_v38, %v592_v37 }
 0x230   : > { %v708_v40 = vadd.f32 %v707_v39, %v596_v36  ;;  %v709_v41 = vpop.f32.mrb[2].mxu1 }
 0x231   : > { %v710_v42 = vpop.f32.mrb[3].mxu1  ;;  %v752_v45 = vpack.c.bf16 %v706_v43, %v706_v43 }
 0x232   : > { %v753_v44 = vpack.c.bf16 %v708_v40, %v708_v40 }
 0x234   : > { %766 = vxpose.xlu0.c.b16.start.end [1/1] (short) (narrow) %v753_v44, 32  ;;  %759 = vrot.lane.b32.xlu1 %v753_v44, %s3959_s29 }
 0x238   : > { %756 = vrot.lane.b32.xlu1 %v752_v45, %s3959_s29 }
 0x23e   : > { %v746_v46 = vpop.f32.mrb[4].mxu1 }
 0x23f   : > { %v2948_v47 = vpop.f32.mrb[5].mxu1  ;;  %v747_v1 = vadd.f32 %v746_v46, %v600_v0 }
 0x240   : > { %v749_v48 = vpop.f32.mrb[6].mxu1 }
 0x241   : > { %v2949_v49 = vpop.f32.mrb[7].mxu1  ;;  %v754_v2 = vpack.c.bf16 %v747_v1, %v747_v1  ;;  %v3172_v48 = vld [vmem:[%s3943_s6] sm:$0xff]  }
 0x242   : > { %v3173_v49 = vld [vmem:[%s3943_s6 + $0x8] sm:$0xff]  }
 0x29a   : > { %v774_v50 = vpop.trf.xlu0 }
 0x29b   : > { %2951 = vmatpush3.bf16.msra.mxu0 %v774_v50  ;;  %v3174_v50 = vld [vmem:[%s3943_s6 + $0x10] sm:$0xff]  }
 0x29c   : > { %2952 = vmatprep.subr.bf16.mxu0 %v3315_v13 }
 0x29e   : > { %v775_v51 = vpop.trf.xlu0 }
 0x29f   : > { %2953 = vmatpush3.bf16.msra.mxu0 %v775_v51  ;;  %v3318_v51 = vmov 1983009808  }
 0x2a2   : > { %2955 = vmatmul.mubr.msk.bf16.vlgmr.msra.gmra.mrb[0].mxu0 %vm798_vm2, %v752_v45 }
 0x2a6   : > { %v760_v52 = vpop.permute.xlu1 %759 }
 0x2a7   : > { %782 = vxpose.xlu1.c.b16.start.end [1/1] (short) (narrow) %v760_v52, 32  ;;  %v1124_v52 = vunpack.c.l.s4 %v3318_v51  ;;  %v3176_v51 = vld [vmem:[%s3947_s10] sm:$0xff]  }
 0x2aa   : > { %v757_v53 = vpop.permute.xlu1 %756 }
 0x30d   : > { %v790_v54 = vpop.trf.xlu1 }
 0x30e   : > { %2959 = vmatpush3.bf16.msra.mxu1 %v790_v54  ;;  %v3319_v54 = vmov 1934713408  }
 0x30f   : > { %2960 = vmatprep.subr.bf16.mxu1 %v3315_v13 }
 0x311   : > { %v791_v55 = vpop.trf.xlu1 }
 0x312   : > { %2961 = vmatpush3.bf16.msra.mxu1 %v791_v55  ;;  %v1155_v55 = vunpack.c.l.s4 %v3319_v54 }
 0x315   : > { %2963 = vmatmul.mubr.msk.bf16.vlgmr.msra.gmra.mrb[8].mxu1 %vm798_vm2, %v757_v53  ;;  %v1125_v53 = vunpack.c.0.s8 %v1124_v52  ;;  %v3178_v52 = vld [vmem:[%s3947_s10 + $0x10] sm:$0xff]  }
 0x375   : > { %v836_v57 = vpop.f32.mrb[0].mxu0 }
 0x376   : > { %v837_v58 = vadd.f32 %v3547_v56, %v836_v57  ;;  %v2956_v59 = vpop.f32.mrb[1].mxu0 }
 0x377   : > { %v839_v60 = vpop.f32.mrb[2].mxu0  ;;  %v1156_v59 = vunpack.c.0.s8 %v1155_v55 }
 0x378   : > { %v2957_v61 = vpop.f32.mrb[3].mxu0  ;;  %v886_v62 = vsel %vm885_vm3, %v837_v58, -inf }
 0x379   : > { %887 = vmax.xlane.f32.xlu1 %v886_v62  ;;  %v3591_v0 = vsub.s32 %v1156_v59, %v3526_v32 }
 0x38a   : > { %763 = vrot.lane.b32.xlu1 %v754_v2, %s3959_s29 }
 0x3ad   : > { %910 = vxpose.xlu1.c.b16.start.end [1/1] (short) (narrow) %v754_v2, 32 }
 0x3e8   : > { %v879_v3 = vpop.f32.mrb[8].mxu1 }
 0x3e9   : > { %v880_v4 = vadd.f32 %v3547_v56, %v879_v3  ;;  %v2964_v5 = vpop.f32.mrb[9].mxu1 }
 0x3ea   : > { %v882_v6 = vpop.f32.mrb[10].mxu1 }
 0x3eb   : > { %v2965_v7 = vpop.f32.mrb[11].mxu1  ;;  %v889_v8 = vsel %vm885_vm3, %v880_v4, -inf }
 0x3ec   : > { %890 = vmax.xlane.f32.xlu0 %v889_v8 }
 0x406   : > { %v888_v9 = vpop.xlane.xlu1 %887 }
 0x407   : > { %v892_v10 = vsub.f32 %v837_v58, %v888_v9  ;;  %v3586_v58 = vsub.s32 %v1125_v53, %v3526_v32  ;;  %v3179_v53 = vld [vmem:[%s3947_s10 + $0x18] sm:$0xff]  }
 0x409   : > { %v894_v12 = vmul.f32 1.442695, %v892_v10 }
 0x40a   : > { %v764_v21 = vpop.permute.xlu1 %763 }
 0x40b   : > { %3222 = vpow2.f32 %v894_v12  ;;  %v3175_v12 = vld [vmem:[%s3943_s6 + $0x18] sm:$0xff]  }
 0x413   : > { %v918_v22 = vpop.trf.xlu1 }
 0x414   : > { %2968 = vmatprep.mubr.msk.bf16.mxu0 %vm885_vm3, %v918_v22 }
 0x415   : > { %v3223_v14 = vpop.eup %3222 }
 0x416   : > { %v898_v15 = vsel %vm885_vm3, %v3223_v14, 0.0 }
 0x417   : > { %899 = vadd.xlane.f32.xlu0 %v898_v15  ;;  %v919_v29 = vpop.trf.xlu1 }
 0x479   : > { %v891_v16 = vpop.xlane.xlu0 %890 }
 0x47a   : > { %v893_v17 = vsub.f32 %v880_v4, %v891_v16 }
 0x47c   : > { %v896_v18 = vmul.f32 1.442695, %v893_v17 }
 0x47e   : > { %3224 = vpow2.f32 %v896_v18 }
 0x488   : > { %v3225_v19 = vpop.eup %3224 }
 0x489   : > { %v901_v20 = vsel %vm885_vm3, %v3225_v19, 0.0 }
 0x48a   : > { %902 = vadd.xlane.f32.xlu0 %v901_v20 }
 0x4a4   : > { %v900_v23 = vpop.xlane.xlu0 %899 }
 0x4a5   : > { %3226 = vrcp.f32 %v900_v23 }
 0x4af   : > { %v3227_v24 = vpop.eup %3226 }
 0x4b0   : > { %v906_v25 = vmul.f32 %v3227_v24, %v3223_v14 }
 0x4b2   : > { %v908_v26 = vpack.c.bf16 %v906_v25, %v906_v25 }
 0x4b4   : > { %3106 = vmatprep.subr.msk.bf16.mxu0 %vm885_vm3, %v908_v26  ;;  %v949_v28 = vsel %vm885_vm3, %v908_v26, 0 }
 0x4b5   : > { %2967 = vmatpush3.bf16.xpose.msra.mxu0 %v949_v28 }
 0x4b6   : > { %2978 = vmatprep.subr.bf16.mxu0 %v3315_v13 }
 0x4b7   : > { %926 = vxpose.xlu0.c.b16.start.end [1/1] (short) (narrow) %v764_v21, 32 }
 0x4bc   : > { %2969 = vmatmul.mubr.msk.bf16.vlgmr.msra.gmra.mrb[4].mxu0 %vm885_vm3, %v919_v29 }
 0x4bd   : > { %2986 = vmatprep.mubr.msk.bf16.mxu0 %vm3316_vm1, %v3315_v13  ;;  %2979 = vmatpush3.bf16.msra.mxu0 %v3172_v48 }
 0x4be   : > { %2980 = vmatprep.subr.bf16.mxu0 %v3315_v13 }
 0x4c1   : > { %2981 = vmatpush3.bf16.msra.mxu0 %v3173_v49 }
 0x4c2   : > { %2982 = vmatprep.subr.bf16.mxu0 %v3315_v13 }
 0x4c5   : > { %2983 = vmatpush3.bf16.msra.mxu0 %v3174_v50 }
 0x4c6   : > { %2984 = vmatprep.subr.bf16.mxu0 %v3315_v13 }
 0x4c9   : > { %2985 = vmatpush3.bf16.msra.mxu0 %v3175_v12  ;;  %v2743_v12 = vld [vmem:[%s3948_s11] ss:$0 sm:$0xff] }
 0x4ca   : > { %3002 = vmatprep.subr.bf16.mxu0 %v3315_v13 }
 0x517   : > { %v903_v30 = vpop.xlane.xlu0 %902 }
 0x518   : > { %3228 = vrcp.f32 %v903_v30 }
 0x51d   : > { %v934_v31 = vpop.trf.xlu0 }
 0x51e   : > { %2974 = vmatprep.mubr.msk.bf16.mxu1 %vm885_vm3, %v934_v31 }
 0x521   : > { %v935_v39 = vpop.trf.xlu0 }
 0x522   : > { %v3229_v34 = vpop.eup %3228 }
 0x523   : > { %v907_v36 = vmul.f32 %v3229_v34, %v3225_v19 }
 0x525   : > { %v909_v37 = vpack.c.bf16 %v907_v36, %v907_v36 }
 0x527   : > { %3107 = vmatprep.subr.msk.bf16.mxu1 %vm885_vm3, %v909_v37  ;;  %v1007_v38 = vsel %vm885_vm3, %v909_v37, 0  ;;  %v2735_v37 = vld [vmem:[%s3944_s7] ss:$0 sm:$0xff] }
 0x528   : > { %2973 = vmatpush3.bf16.xpose.msra.mxu1 %v1007_v38 }
 0x529   : > { %2990 = vmatprep.subr.bf16.mxu1 %v3315_v13 }
 0x52f   : > { %2975 = vmatmul.mubr.msk.bf16.vlgmr.msra.gmra.mrb[12].mxu1 %vm885_vm3, %v935_v39 }
 0x530   : > { %2998 = vmatprep.mubr.msk.bf16.mxu1 %vm3316_vm1, %v3315_v13  ;;  %2991 = vmatpush3.bf16.msra.mxu1 %v3176_v51  ;;  %v3196_v51 = vld [vmem:[%s3941_s4 + $0x94] ss:$12 sps:$4 sm:$0xff]  }
 0x531   : > { %2992 = vmatprep.subr.bf16.mxu1 %v3315_v13 }
 0x58f   : > { %v2970_v40 = vpop.f32.mrb[4].mxu0 }
 0x590   : > { %v985_v41 = vpop.f32.mrb[5].mxu0 }
 0x591   : > { %1058 = vxpose.xlu1.b32.start [1/4] (short) (narrow) %v985_v41, 8  ;;  %v2971_v42 = vpop.f32.mrb[6].mxu0  ;;  %v1326_v41 = vunpack.c.l.bf16 %v3503_v27  ;;  %v3177_v27 = vld [vmem:[%s3947_s10 + $0x8] sm:$0xff]  }
 0x592   : > { %v988_v43 = vpop.f32.mrb[7].mxu0  ;;  %2993 = vmatpush3.bf16.msra.mxu1 %v3177_v27  ;;  %v3194_v27 = vld [vmem:[%s3941_s4 + $0x90] ss:$12 sps:$4 sm:$0xff]  }
 0x593   : > { %2994 = vmatprep.subr.bf16.mxu1 %v3315_v13 }
 0x595   : > { %1059 = vxpose.xlu1.b32.cont [2/4] (short) (narrow) %v988_v43, 8 }
 0x596   : > { %2995 = vmatpush3.bf16.msra.mxu1 %v3178_v52  ;;  %v3199_v52 = vld [vmem:[%s3941_s4 + $0xac] ss:$12 sps:$4 sm:$0xff]  }
 0x597   : > { %2996 = vmatprep.subr.bf16.mxu1 %v3315_v13 }
 0x599   : > { %1060 = vxpose.xlu1.b32.cont [3/4] (short) (narrow) %v2970_v40, 8 }
 0x59a   : > { %2997 = vmatpush3.bf16.msra.mxu1 %v3179_v53  ;;  %v3197_v53 = vld [vmem:[%s3941_s4 + $0xa8] ss:$12 sps:$4 sm:$0xff]  }
 0x59d   : > { %1061 = vxpose.xlu1.b32.end [4/4] (short) (narrow) %v2971_v42, 8 }
 0x602   : > { %v2976_v44 = vpop.f32.mrb[12].mxu1 }
 0x603   : > { %v1043_v45 = vpop.f32.mrb[13].mxu1 }
 0x604   : > { %1090 = vxpose.xlu0.b32.start [1/4] (short) (narrow) %v1043_v45, 8  ;;  %v2977_v46 = vpop.f32.mrb[14].mxu1 }
 0x605   : > { %v1046_v47 = vpop.f32.mrb[15].mxu1 }
 0x608   : > { %1091 = vxpose.xlu0.b32.cont [2/4] (short) (narrow) %v1046_v47, 8 }
 0x60c   : > { %1092 = vxpose.xlu0.b32.cont [3/4] (short) (narrow) %v2976_v44, 8 }
 0x610   : > { %1093 = vxpose.xlu0.b32.end [4/4] (short) (narrow) %v2977_v46, 8 }
 0x611   : > { %v1074_v57 = vpop.trf.xlu1 }
 0x612   : > { %v1122_v60 = vcombine.high %v1074_v57, %v3315_v13  ;;  %v1129_v61 = vrot.slane %v1074_v57, %v3586_v58 }
 0x614   : > { %v1136_v3 = vrot.slane %v1122_v60, %v3586_v58  ;;  %v2741_v60 = vld [vmem:[%s3945_s8] ss:$0 sm:$0xff] }
 0x684   : > { %v1106_v62 = vpop.trf.xlu0 }
 0x685   : > { %v1137_v1 = vcombine.high %v1106_v62, %v3315_v13  ;;  %v1144_v2 = vrot.slane %v1106_v62, %v3586_v58  ;;  %v2742_v62 = vld [vmem:[%s3946_s9] ss:$0 sm:$0xff] }
 0x687   : > { %v1151_v4 = vrot.slane %v1137_v1, %v3586_v58  ;;  %v1152_v5 = vcombine.low %v1129_v61, %v1144_v2  ;;  %v1153_v6 = vcombine.high %v1129_v61, %v1144_v2 }
 0x689   : > { %v1160_v7 = vrot.slane %v1152_v5, %v3591_v0  ;;  %v1167_v8 = vrot.slane %v1153_v6, %v3591_v0  ;;  %v1168_v9 = vcombine.low %v1136_v3, %v1151_v4  ;;  %v1169_v10 = vcombine.high %v1136_v3, %v1151_v4  ;;  %v3180_v4 = vld [vmem:[%s3949_s12] sm:$0xff]   ;;  %v3181_v5 = vld [vmem:[%s3949_s12 + $0x8] sm:$0xff]   ;;  %v3182_v6 = vld [vmem:[%s3949_s12 + $0x10] sm:$0xff]  }
 0x68b   : > { %v1176_v14 = vrot.slane %v1168_v9, %v3591_v0  ;;  %v1183_v15 = vrot.slane %v1169_v10, %v3591_v0  ;;  %v1188_v16 = vcombine.low %v1160_v7, %v1167_v8  ;;  %v2733_v17 = vcombine.high %v1160_v7, %v1167_v8  ;;  %v3184_v7 = vld [vmem:[%s3949_s12 + $0x20] sm:$0xff]   ;;  %v3185_v8 = vld [vmem:[%s3949_s12 + $0x28] sm:$0xff]   ;;  %v3186_v9 = vld [vmem:[%s3949_s12 + $0x30] sm:$0xff]  }
 0x68c   : > { %v3187_v10 = vld [vmem:[%s3949_s12 + $0x38] sm:$0xff]  }
 0x68d   : > { %v1195_v18 = vrot.slane %v1188_v16, %v3586_v58  ;;  %v1203_v19 = vrot.slane %v2733_v17, %v3586_v58  ;;  %v1204_v20 = vcombine.low %v1176_v14, %v1183_v15  ;;  %v2734_v21 = vcombine.high %v1176_v14, %v1183_v15 }
 0x68f   : > { %v1211_v22 = vrot.slane %v1204_v20, %v3586_v58  ;;  %v1219_v23 = vrot.slane %v2734_v21, %v3586_v58  ;;  %v1220_v24 = vcombine.low %v1195_v18, %v1203_v19 }
 0x691   : > { %v1228_v25 = vcombine.low %v1211_v22, %v1219_v23  ;;  %v1227_v26 = vrot.slane %v1220_v24, %v3591_v0 }
 0x693   : > { %v1235_v28 = vrot.slane %v1228_v25, %v3591_v0 }
 0x695   : > { %v1237_v29 = vcombine.high %v1227_v26, %v1235_v28  ;;  %v1236_v30 = vcombine.low %v1227_v26, %v1235_v28 }
 0x697   : > { %1239 = vrot.lane.b32.xlu1 %v1237_v29, %s3958_s26 }
 0x709   : > { %v1240_v31 = vpop.permute.xlu1 %1239 }
 0x70a   : > { %v1242_v34 = vsel %vm798_vm2, %v1236_v30, %v1240_v31  ;;  %v2749_v30 = vld [vmem:[%s3950_s13] ss:$0 sm:$0xff] }
 0x70b   : > { %v1252_v36 = vpack.c.bf16 %v1242_v34, %v1242_v34 }
 0x70d   : > { %2987 = vmatmul.mubr.msk.bf16.vlgmr.msra.gmra.mrb[8].mxu0 %vm534_vm0, %v1252_v36 }
 0x70e   : > { %3018 = vmatprep.mubr.msk.bf16.mxu0 %vm3316_vm1, %v3315_v13  ;;  %3003 = vmatpush3.bf16.msra.mxu0 %v3180_v4 }
 0x70f   : > { %3004 = vmatprep.subr.bf16.mxu0 %v3315_v13 }
 0x712   : > { %3005 = vmatpush3.bf16.msra.mxu0 %v3181_v5  ;;  %v3201_v5 = vld [vmem:[%s3941_s4 + $0x80] ss:$12 sps:$4 sm:$0xff]  }
 0x713   : > { %3006 = vmatprep.subr.bf16.mxu0 %v3315_v13 }
 0x716   : > { %3007 = vmatpush3.bf16.msra.mxu0 %v3182_v6  ;;  %v3202_v6 = vld [vmem:[%s3941_s4 + $0x98] ss:$12 sps:$4 sm:$0xff]  }
 0x717   : > { %3008 = vmatprep.subr.bf16.mxu0 %v3315_v13 }
 0x7e0   : > { %v1320_v38 = vpop.f32.mrb[8].mxu0 }
 0x7e1   : > { %v1321_v39 = vadd.f32 %v2735_v37, %v1320_v38  ;;  %v2988_v40 = vpop.f32.mrb[9].mxu0 }
 0x7e2   : > { %v1323_v42 = vpop.f32.mrb[10].mxu0 }
 0x7e3   : > { %v2989_v43 = vpop.f32.mrb[11].mxu0  ;;  %v1327_v44 = vadd.f32 %v1326_v41, %v1321_v39 }
 0x7e5   : > { %v1330_v45 = vsel %vm534_vm0, %v1327_v44, 0.0 }
 0x7e6   : > { %1331 = vadd.xlane.f32.xlu0 %v1330_v45 }
 0x873   : > { %v1332_v46 = vpop.xlane.xlu0 %1331 }
 0x874   : > { %v1333_v47 = vmul.f32 0.015625, %v1332_v46 }
 0x876   : > { %v1334_v48 = vsub.f32 %v1327_v44, %v1333_v47  ;;  %v3190_v47 = vld [vmem:[%s3941_s4 + $0x64] ss:$12 sps:$4 sm:$0xff]  }
 0x877   : > { %1695 = vmatprep.subr.bf16.mxu1 %v3190_v47 }
 0x878   : > { %v1335_v49 = vmul.f32 %v1334_v48, %v1334_v48 }
 0x87a   : > { %v1336_v50 = vsel %vm534_vm0, %v1335_v49, 0.0  ;;  %v3193_v49 = vld [vmem:[%s3941_s4 + $0x7c] ss:$12 sps:$4 sm:$0xff]  }
 0x87b   : > { %1337 = vadd.xlane.f32.xlu1 %v1336_v50  ;;  %v3191_v50 = vld [vmem:[%s3941_s4 + $0x78] ss:$12 sps:$4 sm:$0xff]  }
 0x908   : > { %v1338_v54 = vpop.xlane.xlu1 %1337 }
 0x909   : > { %v1339_v55 = vmul.f32 0.015625, %v1338_v54 }
 0x90b   : > { %v1340_v57 = vadd.f32 1e-12, %v1339_v55 }
 0x90d   : > { %3230 = vrsqrt.f32 %v1340_v57 }
 0x917   : > { %v3231_v59 = vpop.eup %3230 }
 0x918   : > { %v1342_v61 = vmul.f32 %v3231_v59, %v1334_v48  ;;  %v3188_v48 = vld [vmem:[%s3941_s4 + $0x60] ss:$12 sps:$4 sm:$0xff]  }
 0x91a   : > { %v1349_v1 = vmul.f32 %v2741_v60, %v1342_v61  ;;  %v2758_v60 = vld [vmem:[%s3951_s14] ss:$0 sm:$0xff] }
 0x91c   : > { %v1356_v2 = vadd.f32 %v2742_v62, %v1349_v1  ;;  %v2759_v62 = vld [vmem:[%s3952_s15] ss:$0 sm:$0xff] }
 0x91e   : > { %v1357_v3 = vpack.c.bf16 %v1356_v2, %v1356_v2 }
 0x920   : > { %2999 = vmatmul.mubr.msk.bf16.vlgmr.msra.gmra.mrb[16].mxu1 %vm534_vm0, %v1357_v3  ;;  %v1561_v37 = vunpack.c.l.bf16 %v1357_v3  ;;  %v3200_v3 = vld [vmem:[%s3941_s4 + $0x68] ss:$12 sps:$4 sm:$0xff]  }
 0x921   : > { %1727 = vmatprep.mubr.bf16.mxu1 %v3314_v11  ;;  %v3183_v11 = vld [vmem:[%s3949_s12 + $0x18] sm:$0xff]   ;;  %1696 = vmatpush1.bf16.msra.mxu1 %v3188_v48 }
 0x922   : > { %3009 = vmatpush3.bf16.msra.mxu0 %v3183_v11  ;;  %1697 = vmatprep.subr.bf16.mxu1 %v3193_v49  ;;  %v3203_v11 = vld [vmem:[%s3941_s4 + $0xb0] ss:$12 sps:$4 sm:$0xff]  }
 0x923   : > { %3010 = vmatprep.subr.bf16.mxu0 %v3315_v13 }
 0x925   : > { %1698 = vmatpush1.bf16.msra.mxu1 %v3191_v50 }
 0x926   : > { %3011 = vmatpush3.bf16.msra.mxu0 %v3184_v7  ;;  %1699 = vmatprep.subr.bf16.mxu1 %v3196_v51  ;;  %v2776_v7 = vld [vmem:[%s3942_s5 + $0x3] sm:$0x7] }
 0x927   : > { %3012 = vmatprep.subr.bf16.mxu0 %v3315_v13 }
 0x929   : > { %1700 = vmatpush1.bf16.msra.mxu1 %v3194_v27 }
 0x92a   : > { %3013 = vmatpush3.bf16.msra.mxu0 %v3185_v8  ;;  %1701 = vmatprep.subr.bf16.mxu1 %v3199_v52  ;;  %v1616_v8 = vrot.slane %v2776_v7, %v591_v35 }
 0x92b   : > { %3014 = vmatprep.subr.bf16.mxu0 %v3315_v13 }
 0x92d   : > { %1702 = vmatpush1.bf16.msra.mxu1 %v3197_v53 }
 0x92e   : > { %3015 = vmatpush3.bf16.msra.mxu0 %v3186_v9  ;;  %3022 = vmatprep.subr.bf16.mxu1 %v3315_v13  ;;  %v1620_v9 = vrot.slane %v2776_v7, %v595_v33 }
 0x92f   : > { %3016 = vmatprep.subr.bf16.mxu0 %v3315_v13 }
 0x932   : > { %3017 = vmatpush3.bf16.msra.mxu0 %v3187_v10 }
 0x933   : > { %3034 = vmatprep.subr.bf16.mxu0 %v3315_v13 }
 0x9f3   : > { %v1434_v14 = vpop.f32.mrb[16].mxu1 }
 0x9f4   : > { %v1435_v15 = vadd.f32 %v2743_v12, %v1434_v14  ;;  %v3000_v16 = vpop.f32.mrb[17].mxu1 }
 0x9f5   : > { %v1437_v17 = vpop.f32.mrb[18].mxu1 }
 0x9f6   : > { %v1440_v18 = vmul.f32 %v1435_v15, %v1435_v15  ;;  %v3001_v19 = vpop.f32.mrb[19].mxu1 }
 0x9f8   : > { %v1441_v20 = vmul.f32 %v1440_v18, %v1435_v15 }
 0x9fa   : > { %v1442_v21 = vmul.f32 0.044715, %v1441_v20 }
 0x9fc   : > { %v1443_v22 = vadd.f32 %v1442_v21, %v1435_v15 }
 0x9fe   : > { %v1444_v23 = vmul.f32 0.7978846, %v1443_v22 }
 0xa00   : > { %3232 = vtanh.f32 %v1444_v23 }
 0xa0a   : > { %v3233_v24 = vpop.eup %3232 }
 0xa0b   : > { %v1446_v25 = vadd.f32 1.0, %v3233_v24 }
 0xa0d   : > { %v1447_v26 = vmul.f32 0.5, %v1446_v25 }
 0xa0f   : > { %v1448_v28 = vmul.f32 %v1447_v26, %v1435_v15 }
 0xa11   : > { %v1466_v29 = vpack.c.bf16 %v1448_v28, %v1448_v28 }
 0xa13   : > { %3019 = vmatmul.mubr.bf16.vlgmr.msra.gmra.mrb[12].mxu0 %v1466_v29 }
 0xa14   : > { %3038 = vmatprep.mubr.msk.bf16.mxu0 %vm3316_vm1, %v3315_v13 }
 0xae6   : > { %v1555_v31 = vpop.f32.mrb[12].mxu0 }
 0xae7   : > { %v1556_v34 = vadd.f32 %v2749_v30, %v1555_v31  ;;  %v3020_v36 = vpop.f32.mrb[13].mxu0 }
 0xae8   : > { %v1558_v38 = vpop.f32.mrb[14].mxu0 }
 0xae9   : > { %v3021_v39 = vpop.f32.mrb[15].mxu0  ;;  %v1562_v40 = vadd.f32 %v1561_v37, %v1556_v34  ;;  %v1624_v38 = vrot.slane %v2776_v7, %v599_v63 }
 0xaeb   : > { %v1565_v41 = vsel %vm534_vm0, %v1562_v40, 0.0 }
 0xaec   : > { %1566 = vadd.xlane.f32.xlu0 %v1565_v41 }
 0xb79   : > { %v1567_v42 = vpop.xlane.xlu0 %1566 }
 0xb7a   : > { %v1568_v43 = vmul.f32 0.015625, %v1567_v42 }
 0xb7c   : > { %v1569_v44 = vsub.f32 %v1562_v40, %v1568_v43 }
 0xb7e   : > { %v1570_v45 = vmul.f32 %v1569_v44, %v1569_v44 }
 0xb80   : > { %v1571_v46 = vsel %vm534_vm0, %v1570_v45, 0.0 }
 0xb81   : > { %1572 = vadd.xlane.f32.xlu0 %v1571_v46 }
 0xc0e   : > { %v1573_v54 = vpop.xlane.xlu0 %1572 }
 0xc0f   : > { %v1574_v55 = vmul.f32 0.015625, %v1573_v54 }
 0xc11   : > { %v1575_v57 = vadd.f32 1e-12, %v1574_v55 }
 0xc13   : > { %3234 = vrsqrt.f32 %v1575_v57 }
 0xc1d   : > { %v3235_v59 = vpop.eup %3234 }
 0xc1e   : > { %v1577_v61 = vmul.f32 %v3235_v59, %v1569_v44 }
 0xc20   : > { %v1584_v1 = vmul.f32 %v2758_v60, %v1577_v61 }
 0xc22   : > { %v1591_v2 = vadd.f32 %v2759_v62, %v1584_v1 }
 0xc24   : > { %v3721_v4 = vpack.c.bf16 %v1591_v2, %v1591_v2 }
 0xc26   : > { %2789 = vmatmul.mubr.msk.bf16.vlgmr.msra.gmra.mrb[20].mxu1 %vm534_vm0, %v3721_v4 }
 0xc27   : > { %3023 = vmatpush3.bf16.msra.mxu1 %v3200_v3  ;;  %3030 = vmatprep.mubr.msk.bf16.mxu1 %vm3316_vm1, %v3315_v13 }
 0xc28   : > { %3024 = vmatprep.subr.bf16.mxu1 %v3315_v13 }
 0xc2b   : > { %3025 = vmatpush3.bf16.msra.mxu1 %v3201_v5 }
 0xc2c   : > { %3026 = vmatprep.subr.bf16.mxu1 %v3315_v13 }
 0xc2f   : > { %3027 = vmatpush3.bf16.msra.mxu1 %v3202_v6 }
 0xc30   : > { %3028 = vmatprep.subr.bf16.mxu1 %v3315_v13 }
 0xc33   : > { %3029 = vmatpush3.bf16.msra.mxu1 %v3203_v11 }
 0xc34   : > { %3042 = vmatprep.subr.bf16.mxu1 %v3315_v13 }
 0xc36   : > { %3031 = vmatmul.mubr.msk.bf16.vlgmr.msra.gmra.mrb[24].mxu1 %vm534_vm0, %v3721_v4 }
 0xc37   : > { %3046 = vmatprep.mubr.msk.bf16.mxu1 %vm3316_vm1, %v3315_v13 }
 0xcf9   : > { %v1729_v10 = vpop.f32.mrb[20].mxu1 }
 0xcfa   : > { %v1730_v12 = vadd.f32 %v1729_v10, %v1616_v8  ;;  %v1731_v14 = vpop.f32.mrb[21].mxu1 }
 0xcfb   : > { %v1732_v15 = vadd.f32 %v1731_v14, %v1620_v9  ;;  %v1733_v16 = vpop.f32.mrb[22].mxu1 }
 0xcfc   : > { %v1776_v17 = vpack.c.bf16 %v1730_v12, %v1730_v12  ;;  %v1734_v18 = vpop.f32.mrb[23].mxu1 }
 0xcfd   : > { %v1777_v19 = vpack.c.bf16 %v1732_v15, %v1732_v15  ;;  %v3204_v18 = vld [vmem:[%s3943_s6 + $0x20] sm:$0xff]  }
 0xcfe   : > { %1780 = vrot.lane.b32.xlu1 %v1776_v17, %s3971_s23 }
 0xcff   : > { %1783 = vrot.lane.b32.xlu0 %v1777_v19, %s3971_s23 }
 0xd09   : > { %v1770_v20 = vpop.f32.mrb[24].mxu1 }
 0xd0a   : > { %v3032_v21 = vpop.f32.mrb[25].mxu1  ;;  %v1771_v39 = vadd.f32 %v1770_v20, %v1624_v38  ;;  %v3206_v20 = vld [vmem:[%s3943_s6 + $0x30] sm:$0xff]  }
 0xd0b   : > { %v1773_v22 = vpop.f32.mrb[26].mxu1 }
 0xd0c   : > { %v3033_v23 = vpop.f32.mrb[27].mxu1  ;;  %v1778_v40 = vpack.c.bf16 %v1771_v39, %v1771_v39 }
 0xd1d   : > { %1790 = vxpose.xlu0.c.b16.start.end [1/1] (short) (narrow) %v1777_v19, 32  ;;  %v3205_v19 = vld [vmem:[%s3943_s6 + $0x28] sm:$0xff]  }
 0xd70   : > { %v1781_v25 = vpop.permute.xlu1 %1780 }
 0xd71   : > { %v1784_v35 = vpop.permute.xlu0 %1783 }
 0xd72   : > { %1806 = vxpose.xlu1.c.b16.start.end [1/1] (short) (narrow) %v1784_v35, 32 }
 0xd83   : > { %v1798_v33 = vpop.trf.xlu0 }
 0xd84   : > { %3035 = vmatpush3.bf16.msra.mxu0 %v1798_v33 }
 0xd85   : > { %3036 = vmatprep.subr.bf16.mxu0 %v3315_v13 }
 0xd87   : > { %v1799_v24 = vpop.trf.xlu0 }
 0xd88   : > { %3037 = vmatpush3.bf16.msra.mxu0 %v1799_v24 }
 0xd8b   : > { %3039 = vmatmul.mubr.msk.bf16.vlgmr.msra.gmra.mrb[16].mxu0 %vm798_vm2, %v1776_v17 }
 0xdd8   : > { %v1814_v26 = vpop.trf.xlu1 }
 0xdd9   : > { %3043 = vmatpush3.bf16.msra.mxu1 %v1814_v26 }
 0xdda   : > { %3044 = vmatprep.subr.bf16.mxu1 %v3315_v13 }
 0xddc   : > { %v1815_v28 = vpop.trf.xlu1 }
 0xddd   : > { %3045 = vmatpush3.bf16.msra.mxu1 %v1815_v28 }
 0xde0   : > { %3047 = vmatmul.mubr.msk.bf16.vlgmr.msra.gmra.mrb[28].mxu1 %vm798_vm2, %v1781_v25 }
 0xe5e   : > { %v1859_v29 = vpop.f32.mrb[16].mxu0 }
 0xe5f   : > { %v1860_v30 = vadd.f32 %v3547_v56, %v1859_v29  ;;  %v3040_v31 = vpop.f32.mrb[17].mxu0 }
 0xe60   : > { %v1862_v34 = vpop.f32.mrb[18].mxu0 }
 0xe61   : > { %v3041_v36 = vpop.f32.mrb[19].mxu0  ;;  %v1908_v37 = vsel %vm885_vm3, %v1860_v30, -inf }
 0xe62   : > { %1909 = vmax.xlane.f32.xlu0 %v1908_v37  ;;  %v3207_v37 = vld [vmem:[%s3943_s6 + $0x38] sm:$0xff]  }
 0xe78   : > { %1787 = vrot.lane.b32.xlu0 %v1778_v40, %s3971_s23  ;;  %s522_s23 = scalar_lea.vmem [#allocation2], %s521_s19 }
 0xe79   : > { %s2641_s30 = sshll.u32 %s522_s23, 4  ;;  %s3897_s30 = int_to_ptr.vmem [resolvable:$true] %s2641_s30 }
 0xe7a   : > { %s3250_s29 = scalar_lea.vmem %s3897_s30, 16 }
 0xe7b   : > { %p3251_p11 = scmp.ne.s32.totalorder %s3897_s30, %s3250_s29 }
 0xe7d   : > { %p3252_p12 = pnand %p3251_p11, %p3445_p5 }
 0xe7f   : > { %p3253_p13 = pneg %p3252_p12 }
 0xeb3   : > { %v1902_v41 = vpop.f32.mrb[28].mxu1 }
 0xeb4   : > { %v1903_v42 = vadd.f32 %v3547_v56, %v1902_v41  ;;  %v3048_v43 = vpop.f32.mrb[29].mxu1 }
 0xeb5   : > { %v1905_v44 = vpop.f32.mrb[30].mxu1 }
 0xeb6   : > { %v3049_v45 = vpop.f32.mrb[31].mxu1  ;;  %v1911_v46 = vsel %vm885_vm3, %v1903_v42, -inf }
 0xeb7   : > { %1912 = vmax.xlane.f32.xlu1 %v1911_v46 }
 0xeef   : > { %v1910_v47 = vpop.xlane.xlu0 %1909 }
 0xef0   : > { %v1914_v48 = vsub.f32 %v1860_v30, %v1910_v47 }
 0xef2   : > { %v1916_v49 = vmul.f32 1.442695, %v1914_v48 }
 0xef3   : > { %v1788_v50 = vpop.permute.xlu0 %1787 }
 0xef4   : > { %3236 = vpow2.f32 %v1916_v49  ;;  %1948 = vxpose.xlu0.c.b16.start.end [1/1] (short) (narrow) %v1788_v50, 32 }
 0xefe   : > { %v3237_v32 = vpop.eup %3236 }
 0xeff   : > { %v1920_v63 = vsel %vm885_vm3, %v3237_v32, 0.0 }
 0xf00   : > { %1921 = vadd.xlane.f32.xlu1 %v1920_v63 }
 0xf44   : > { %v1913_v51 = vpop.xlane.xlu1 %1912 }
 0xf45   : > { %v1915_v27 = vsub.f32 %v1903_v42, %v1913_v51 }
 0xf47   : > { %v1918_v52 = vmul.f32 1.442695, %v1915_v27 }
 0xf49   : > { %3238 = vpow2.f32 %v1918_v52 }
 0xf53   : > { %v3239_v56 = vpop.eup %3238 }
 0xf54   : > { %v1923_v53 = vsel %vm885_vm3, %v3239_v56, 0.0 }
 0xf55   : > { %1924 = vadd.xlane.f32.xlu1 %v1923_v53 }
 0xf5a   : > { %v1956_v54 = vpop.trf.xlu0 }
 0xf5b   : > { %3058 = vmatprep.mubr.msk.bf16.mxu1 %vm885_vm3, %v1956_v54 }
 0xf5e   : > { %v1957_v7 = vpop.trf.xlu0 }
 0xf82   : > { %1932 = vxpose.xlu1.c.b16.start.end [1/1] (short) (narrow) %v1778_v40, 32 }
 0xf8d   : > { %v1922_v55 = vpop.xlane.xlu1 %1921 }
 0xf8e   : > { %3240 = vrcp.f32 %v1922_v55  ;;  %v2350_v55 = vunpack.c.l.bf16 %v3721_v4  ;;  %v3209_v4 = vld [vmem:[%s3947_s10 + $0x28] sm:$0xff]  }
 0xf98   : > { %v3241_v57 = vpop.eup %3240 }
 0xf99   : > { %v1928_v59 = vmul.f32 %v3241_v57, %v3237_v32 }
 0xf9b   : > { %v1930_v60 = vpack.c.bf16 %v1928_v59, %v1928_v59 }
 0xf9d   : > { %3108 = vmatprep.subr.msk.bf16.mxu0 %vm885_vm3, %v1930_v60  ;;  %v1971_v61 = vsel %vm885_vm3, %v1930_v60, 0 }
 0xf9e   : > { %3051 = vmatpush3.bf16.xpose.msra.mxu0 %v1971_v61 }
 0xf9f   : > { %3062 = vmatprep.subr.bf16.mxu0 %v3315_v13 }
 0xfe2   : > { %v1925_v62 = vpop.xlane.xlu1 %1924 }
 0xfe3   : > { %3242 = vrcp.f32 %v1925_v62 }
 0xfe8   : > { %v1940_v1 = vpop.trf.xlu1 }
 0xfe9   : > { %3052 = vmatprep.mubr.msk.bf16.mxu0 %vm885_vm3, %v1940_v1 }
 0xfec   : > { %v1941_v2 = vpop.trf.xlu1 }
 0xfed   : > { %v3243_v3 = vpop.eup %3242  ;;  %3053 = vmatmul.mubr.msk.bf16.vlgmr.msra.gmra.mrb[20].mxu0 %vm885_vm3, %v1941_v2 }
 0xfee   : > { %v1929_v5 = vmul.f32 %v3243_v3, %v3239_v56  ;;  %3070 = vmatprep.mubr.msk.bf16.mxu0 %vm3316_vm1, %v3315_v13  ;;  %3063 = vmatpush3.bf16.msra.mxu0 %v3204_v18 }
 0xfef   : > { %3064 = vmatprep.subr.bf16.mxu0 %v3315_v13 }
 0xff0   : > { %v1931_v6 = vpack.c.bf16 %v1929_v5, %v1929_v5 }
 0xff2   : > { %3109 = vmatprep.subr.msk.bf16.mxu1 %vm885_vm3, %v1931_v6  ;;  %v2029_v11 = vsel %vm885_vm3, %v1931_v6, 0  ;;  %3065 = vmatpush3.bf16.msra.mxu0 %v3205_v19  ;;  %v3208_v6 = vld [vmem:[%s3947_s10 + $0x20] sm:$0xff]  }
 0xff3   : > { %3057 = vmatpush3.bf16.xpose.msra.mxu1 %v2029_v11  ;;  %3066 = vmatprep.subr.bf16.mxu0 %v3315_v13  ;;  %v3210_v11 = vld [vmem:[%s3947_s10 + $0x30] sm:$0xff]  }
 0xff4   : > { %3074 = vmatprep.subr.bf16.mxu1 %v3315_v13 }
 0xff6   : > { %3067 = vmatpush3.bf16.msra.mxu0 %v3206_v20  ;;  %v3212_v20 = vld [vmem:[%s3949_s12 + $0x40] sm:$0xff]  }
 0xff7   : > { %3068 = vmatprep.subr.bf16.mxu0 %v3315_v13 }
 0xffa   : > { %3059 = vmatmul.mubr.msk.bf16.vlgmr.msra.gmra.mrb[32].mxu1 %vm885_vm3, %v1957_v7  ;;  %3069 = vmatpush3.bf16.msra.mxu0 %v3207_v37  ;;  %v3211_v7 = vld [vmem:[%s3947_s10 + $0x38] sm:$0xff]  }
 0xffb   : > { %3082 = vmatprep.mubr.msk.bf16.mxu1 %vm3316_vm1, %v3315_v13  ;;  %3086 = vmatprep.subr.bf16.mxu0 %v3315_v13 }
 0xffc   : > { %3075 = vmatpush3.bf16.msra.mxu1 %v3208_v6 }
 0xffd   : > { %3076 = vmatprep.subr.bf16.mxu1 %v3315_v13 }
0x1000   : > { %3077 = vmatpush3.bf16.msra.mxu1 %v3209_v4 }
0x1001   : > { %3078 = vmatprep.subr.bf16.mxu1 %v3315_v13 }
0x1004   : > { %3079 = vmatpush3.bf16.msra.mxu1 %v3210_v11 }
0x1005   : > { %3080 = vmatprep.subr.bf16.mxu1 %v3315_v13 }
0x1008   : > { %3081 = vmatpush3.bf16.msra.mxu1 %v3211_v7 }
0x10c0   : > { %v3054_v8 = vpop.f32.mrb[20].mxu0 }
0x10c1   : > { %v2007_v9 = vpop.f32.mrb[21].mxu0 }
0x10c2   : > { %2080 = vxpose.xlu0.b32.start [1/4] (short) (narrow) %v2007_v9, 8  ;;  %v3055_v10 = vpop.f32.mrb[22].mxu0 }
0x10c3   : > { %v2010_v12 = vpop.f32.mrb[23].mxu0 }
0x10c6   : > { %2081 = vxpose.xlu0.b32.cont [2/4] (short) (narrow) %v2010_v12, 8 }
0x10ca   : > { %2082 = vxpose.xlu0.b32.cont [3/4] (short) (narrow) %v3054_v8, 8 }
0x10cd   : > { %v3060_v14 = vpop.f32.mrb[32].mxu1 }
0x10ce   : > { %v2065_v15 = vpop.f32.mrb[33].mxu1  ;;  %2083 = vxpose.xlu0.b32.end [4/4] (short) (narrow) %v3055_v10, 8 }
0x10cf   : > { %2112 = vxpose.xlu1.b32.start [1/4] (short) (narrow) %v2065_v15, 8  ;;  %v3061_v16 = vpop.f32.mrb[34].mxu1 }
0x10d0   : > { %v2068_v17 = vpop.f32.mrb[35].mxu1 }
0x10d3   : > { %2113 = vxpose.xlu1.b32.cont [2/4] (short) (narrow) %v2068_v17, 8 }
0x10d7   : > { %2114 = vxpose.xlu1.b32.cont [3/4] (short) (narrow) %v3060_v14, 8  ;;  %v2816_v14 = vld [vmem:[%s3945_s8 + $0x1] ss:$0 sm:$0xff] }
0x10db   : > { %2115 = vxpose.xlu1.b32.end [4/4] (short) (narrow) %v3061_v16, 8  ;;  %v2817_v16 = vld [vmem:[%s3946_s9 + $0x1] ss:$0 sm:$0xff] }
0x1142   : > { %v2096_v21 = vpop.trf.xlu0 }
0x1143   : > { %v2144_v22 = vcombine.high %v2096_v21, %v3315_v13  ;;  %v2151_v23 = vrot.slane %v2096_v21, %v3586_v58  ;;  %v3213_v21 = vld [vmem:[%s3949_s12 + $0x48] sm:$0xff]  }
0x1145   : > { %v2158_v25 = vrot.slane %v2144_v22, %v3586_v58  ;;  %v3214_v22 = vld [vmem:[%s3949_s12 + $0x50] sm:$0xff]  }
0x114f   : > { %v2128_v35 = vpop.trf.xlu1 }
0x1150   : > { %v2159_v33 = vcombine.high %v2128_v35, %v3315_v13  ;;  %v2166_v24 = vrot.slane %v2128_v35, %v3586_v58  ;;  %v3216_v35 = vld [vmem:[%s3949_s12 + $0x60] sm:$0xff]  }
0x1152   : > { %v2173_v26 = vrot.slane %v2159_v33, %v3586_v58  ;;  %v2174_v28 = vcombine.low %v2151_v23, %v2166_v24  ;;  %v2175_v29 = vcombine.high %v2151_v23, %v2166_v24  ;;  %v3215_v23 = vld [vmem:[%s3949_s12 + $0x58] sm:$0xff]   ;;  %v3217_v33 = vld [vmem:[%s3949_s12 + $0x68] sm:$0xff]   ;;  %v3218_v24 = vld [vmem:[%s3949_s12 + $0x70] sm:$0xff]  }
0x1154   : > { %v2182_v30 = vrot.slane %v2174_v28, %v3591_v0  ;;  %v2189_v31 = vrot.slane %v2175_v29, %v3591_v0  ;;  %v2190_v34 = vcombine.low %v2158_v25, %v2173_v26  ;;  %v2191_v36 = vcombine.high %v2158_v25, %v2173_v26  ;;  %v3219_v25 = vld [vmem:[%s3949_s12 + $0x78] sm:$0xff]   ;;  %v2827_v26 = vld [vmem:[%s3948_s11 + $0x1] ss:$0 sm:$0xff] }
0x1156   : > { %v2198_v38 = vrot.slane %v2190_v34, %v3591_v0  ;;  %v2205_v39 = vrot.slane %v2191_v36, %v3591_v0  ;;  %v2210_v40 = vcombine.low %v2182_v30, %v2189_v31  ;;  %v2797_v41 = vcombine.high %v2182_v30, %v2189_v31 }
0x1158   : > { %v2217_v42 = vrot.slane %v2210_v40, %v3586_v58  ;;  %v2225_v43 = vrot.slane %v2797_v41, %v3586_v58  ;;  %v2226_v44 = vcombine.low %v2198_v38, %v2205_v39  ;;  %v2798_v45 = vcombine.high %v2198_v38, %v2205_v39 }
0x115a   : > { %v2233_v46 = vrot.slane %v2226_v44, %v3586_v58  ;;  %v2241_v47 = vrot.slane %v2798_v45, %v3586_v58  ;;  %v2242_v48 = vcombine.low %v2217_v42, %v2225_v43  ;;  %v2808_v58 = vld [vmem:[%s3944_s7 + $0x1] ss:$0 sm:$0xff] }
0x115b   : > { %v2850_v45 = vld [vmem:[%s3950_s13 + $0x1] ss:$0 sm:$0xff] }
0x115c   : > { %v2250_v49 = vcombine.low %v2233_v46, %v2241_v47  ;;  %v2249_v50 = vrot.slane %v2242_v48, %v3591_v0 }
0x115e   : > { %v2257_v32 = vrot.slane %v2250_v49, %v3591_v0 }
0x1160   : > { %v2259_v63 = vcombine.high %v2249_v50, %v2257_v32  ;;  %v2258_v51 = vcombine.low %v2249_v50, %v2257_v32 }
0x1162   : > { %2261 = vrot.lane.b32.xlu0 %v2259_v63, %s3972_s28  ;;  %s2863_s28 = sshll.u32 %s3428_s25, 4  ;;  %s3321_s25 = smov [#allocation2]  }
0x1163   : > { %s3895_s1 = scalar_lea.hbm %s3953_s16, %s2863_s28  ;;  %s3254_s26 = sshll.u32 %s3321_s25, 4  ;;  %s3255_s26 = int_to_ptr.vmem [resolvable:$false] %s3254_s26 }
0x1164   : > { %s3256_s18 = scalar_lea.vmem %s3255_s26, 32  ;;  %p3257_p0 = scmp.lt.s32.totalorder %s3897_s30, %s3255_s26 }
0x1165   : > { %p3258_p1 = scmp.lt.s32.totalorder %s3256_s18, %s3250_s29 }
0x1167   : > { %p3259_p2 = por %p3258_p1, %p3257_p0 }
0x1169   : > { %p3260_p3 = pnand %p3259_p2, %p3253_p13 }
0x11d4   : > { %v2262_v27 = vpop.permute.xlu0 %2261 }
0x11d5   : > { %v2264_v52 = vsel %vm798_vm2, %v2258_v51, %v2262_v27 }
0x11d6   : > { %v2276_v56 = vpack.c.bf16 %v2264_v52, %v2264_v52 }
0x11d8   : > { %3071 = vmatmul.mubr.msk.bf16.vlgmr.msra.gmra.mrb[24].mxu0 %vm534_vm0, %v2276_v56 }
0x11d9   : > { %3102 = vmatprep.mubr.msk.bf16.mxu0 %vm3316_vm1, %v3315_v13  ;;  %3087 = vmatpush3.bf16.msra.mxu0 %v3212_v20 }
0x11da   : > { %3088 = vmatprep.subr.bf16.mxu0 %v3315_v13 }
0x11dd   : > { %3089 = vmatpush3.bf16.msra.mxu0 %v3213_v21 }
0x11de   : > { %3090 = vmatprep.subr.bf16.mxu0 %v3315_v13 }
0x11e1   : > { %3091 = vmatpush3.bf16.msra.mxu0 %v3214_v22 }
0x11e2   : > { %3092 = vmatprep.subr.bf16.mxu0 %v3315_v13 }
0x11e5   : > { %3093 = vmatpush3.bf16.msra.mxu0 %v3215_v23 }
0x11e6   : > { %3094 = vmatprep.subr.bf16.mxu0 %v3315_v13 }
0x11e9   : > { %3095 = vmatpush3.bf16.msra.mxu0 %v3216_v35 }
0x11ea   : > { %3096 = vmatprep.subr.bf16.mxu0 %v3315_v13 }
0x11ed   : > { %3097 = vmatpush3.bf16.msra.mxu0 %v3217_v33 }
0x11ee   : > { %3098 = vmatprep.subr.bf16.mxu0 %v3315_v13 }
0x11f1   : > { %3099 = vmatpush3.bf16.msra.mxu0 %v3218_v24 }
0x11f2   : > { %3100 = vmatprep.subr.bf16.mxu0 %v3315_v13 }
0x11f5   : > { %3101 = vmatpush3.bf16.msra.mxu0 %v3219_v25 }
0x12ab   : > { %v2344_v53 = vpop.f32.mrb[24].mxu0 }
0x12ac   : > { %v2345_v54 = vadd.f32 %v2808_v58, %v2344_v53  ;;  %v3072_v0 = vpop.f32.mrb[25].mxu0 }
0x12ad   : > { %v2347_v57 = vpop.f32.mrb[26].mxu0 }
0x12ae   : > { %v3073_v59 = vpop.f32.mrb[27].mxu0  ;;  %v2351_v60 = vadd.f32 %v2350_v55, %v2345_v54 }
0x12af   : > { %v2861_v59 = vld [vmem:[%s3951_s14 + $0x1] ss:$0 sm:$0xff] }
0x12b0   : > { %v2356_v61 = vsel %vm534_vm0, %v2351_v60, 0.0 }
0x12b1   : > { %2357 = vadd.xlane.f32.xlu1 %v2356_v61  ;;  %v2862_v61 = vld [vmem:[%s3952_s15 + $0x1] ss:$0 sm:$0xff] }
0x133e   : > { %v2358_v62 = vpop.xlane.xlu1 %2357 }
0x133f   : > { %v2359_v1 = vmul.f32 0.015625, %v2358_v62 }
0x1341   : > { %v2360_v2 = vsub.f32 %v2351_v60, %v2359_v1 }
0x1343   : > { %v2361_v3 = vmul.f32 %v2360_v2, %v2360_v2 }
0x1345   : > { %v2362_v5 = vsel %vm534_vm0, %v2361_v3, 0.0 }
0x1346   : > { %2363 = vadd.xlane.f32.xlu0 %v2362_v5 }
0x13d3   : > { %v2364_v8 = vpop.xlane.xlu0 %2363 }
0x13d4   : > { %v2365_v9 = vmul.f32 0.015625, %v2364_v8 }
0x13d6   : > { %v2366_v10 = vadd.f32 1e-12, %v2365_v9 }
0x13d8   : > { %3244 = vrsqrt.f32 %v2366_v10 }
0x13e2   : > { %v3245_v12 = vpop.eup %3244 }
0x13e3   : > { %v2368_v15 = vmul.f32 %v3245_v12, %v2360_v2 }
0x13e5   : > { %v2375_v17 = vmul.f32 %v2816_v14, %v2368_v15 }
0x13e7   : > { %v2382_v18 = vadd.f32 %v2817_v16, %v2375_v17 }
0x13e9   : > { %v2383_v19 = vpack.c.bf16 %v2382_v18, %v2382_v18 }
0x13eb   : > { %3083 = vmatmul.mubr.msk.bf16.vlgmr.msra.gmra.mrb[36].mxu1 %vm534_vm0, %v2383_v19  ;;  %v2591_v49 = vunpack.c.l.bf16 %v2383_v19 }
0x14be   : > { %v2462_v28 = vpop.f32.mrb[36].mxu1 }
0x14bf   : > { %v2463_v29 = vadd.f32 %v2827_v26, %v2462_v28  ;;  %v3084_v30 = vpop.f32.mrb[37].mxu1 }
0x14c0   : > { %v2465_v31 = vpop.f32.mrb[38].mxu1 }
0x14c1   : > { %v2468_v34 = vmul.f32 %v2463_v29, %v2463_v29  ;;  %v3085_v36 = vpop.f32.mrb[39].mxu1 }
0x14c3   : > { %v2469_v37 = vmul.f32 %v2468_v34, %v2463_v29 }
0x14c5   : > { %v2470_v38 = vmul.f32 0.044715, %v2469_v37 }
0x14c7   : > { %v2471_v39 = vadd.f32 %v2470_v38, %v2463_v29 }
0x14c9   : > { %v2472_v40 = vmul.f32 0.7978846, %v2471_v39 }
0x14cb   : > { %3246 = vtanh.f32 %v2472_v40 }
0x14d5   : > { %v3247_v41 = vpop.eup %3246 }
0x14d6   : > { %v2474_v42 = vadd.f32 1.0, %v3247_v41 }
0x14d8   : > { %v2475_v43 = vmul.f32 0.5, %v2474_v42 }
0x14da   : > { %v2476_v13 = vmul.f32 %v2475_v43, %v2463_v29 }
0x14dc   : > { %v2496_v44 = vpack.c.bf16 %v2476_v13, %v2476_v13 }
0x14de   : > { %3103 = vmatmul.mubr.bf16.vlgmr.msra.gmra.mrb[28].mxu0 %v2496_v44 }
0x15b1   : > { %v2585_v46 = vpop.f32.mrb[28].mxu0 }
0x15b2   : > { %v2586_v47 = vadd.f32 %v2850_v45, %v2585_v46  ;;  %v3104_v48 = vpop.f32.mrb[29].mxu0 }
0x15b3   : > { %v2588_v50 = vpop.f32.mrb[30].mxu0 }
0x15b4   : > { %v3105_v32 = vpop.f32.mrb[31].mxu0  ;;  %v2592_v63 = vadd.f32 %v2591_v49, %v2586_v47 }
0x15b6   : > { %v2597_v51 = vsel %vm534_vm0, %v2592_v63, 0.0 }
0x15b7   : > { %2598 = vadd.xlane.f32.xlu1 %v2597_v51 }
0x1644   : > { %v2599_v27 = vpop.xlane.xlu1 %2598 }
0x1645   : > { %v2600_v52 = vmul.f32 0.015625, %v2599_v27 }
0x1647   : > { %v2601_v56 = vsub.f32 %v2592_v63, %v2600_v52 }
0x1649   : > { %v2602_v58 = vmul.f32 %v2601_v56, %v2601_v56 }
0x164b   : > { %v2603_v53 = vsel %vm534_vm0, %v2602_v58, 0.0 }
0x164c   : > { %2604 = vadd.xlane.f32.xlu1 %v2603_v53 }
0x16d9   : > { %v2605_v54 = vpop.xlane.xlu1 %2604 }
0x16da   : > { %v2606_v0 = vmul.f32 0.015625, %v2605_v54 }
0x16dc   : > { %v2607_v55 = vadd.f32 1e-12, %v2606_v0 }
0x16de   : > { %3248 = vrsqrt.f32 %v2607_v55 }
0x16e8   : > { %v3249_v57 = vpop.eup %3248 }
0x16e9   : > { %v2609_v60 = vmul.f32 %v3249_v57, %v2601_v56 }
0x16eb   : > { %v2616_v62 = vmul.f32 %v2861_v59, %v2609_v60 }
0x16ed   : > { %v2623_v1 = vadd.f32 %v2862_v61, %v2616_v62 }
0x16ef   : > { %v2624_v2 = vpack.c.bf16 %v2623_v1, %v2623_v1 }
0x16f1   : > { %v2625_v3 = vunpack.c.l.bf16 %v2624_v2 }
0x16f3   : > { %2627 = vst.msk [vmem:[%s522_s23] sm:$0x1] %vm2626_vm4, %v2625_v3 }
0x16f4   : > { %3263 = shalt.err (!%p3260_p3)
}
0x16f5   : > { %s3264_s19 = scalar_lea.hbm %s3895_s1, 16  ;;  %s3268_s27 = scalar_lea.hbm %s3953_s16, 32 }
0x16f6   : > { %p3265_p4 = scmp.ne.s32.totalorder %s3895_s1, %s3264_s19  ;;  %p3269_p9 = scmp.lt.u32.totalorder %s3895_s1, %s3953_s16 }
0x16f7   : > { %p3270_p10 = scmp.lt.u32.totalorder %s3268_s27, %s3264_s19  ;;  %p3272_p12 = scmp.lt.u32.totalorder %s3264_s19, %s3895_s1 }
0x16f8   : > { %p3266_p7 = pnand %p3265_p4, %p3445_p5 }
0x16f9   : > { %p3271_p11 = por %p3270_p10, %p3269_p9 }
0x16fa   : > { %p3267_p8 = pneg %p3266_p7 }
0x16fb   : > { %p3273_p13 = por %p3272_p12, %p3271_p11 }
0x16fd   : > { %p3274_p0 = pnand %p3273_p13, %p3267_p8 }
0x16ff   : > { %3277 = shalt.err (!%p3274_p0)
}
0x1700   : > { %3110 = dma.vmem_to_hbm [thread:$0]  (%p3445_p5), %s3897_s30, 16, %s3895_s1, %s2629_s20  }
0x1701 PF: > { %p3116_p1 = scmp.ge.s32.totalorder %s3312_s24, 2  ;;  %s2653_s26 = sand.u32 1, %s3300_s21  }
0x1702   : > { %s2654_s18 = scalar_lea.sflag [#allocation3], %s2653_s26 }
0x1703   : > { %p3113_p2 = pnand %p3116_p1, %p3449_p6 }
0x1705   : > { %3295 = dma.done.wait (!%p3113_p2), %s2654_s18, 16  }
0x1706   : > { %3297 = vsyncadd (!%p3113_p2), %s2654_s18, 4294967280  ;;  %s3974_s24 = sld [smem:[#allocation6_spill]]  ;;  %s3975_s19 = sld [smem:[#allocation5_spill]] }
0x1707   : > { %s3976_s23 = sld [smem:[#allocation7_spill]]  ;;  %s3977_s21 = smov %s3304_s22 }
0x170c   : > { %p26_p3 = scmp.ge.s32.totalorder %s3974_s24, 4   ;;  %s3978_s22 = smov %s3975_s19 }
0x170e   :  { %28 = sbr.rel (!%p26_p3) target bundleno = 6 (0x6), region = 134 }
0x1715   :  { %2658 = vsyncpa [#allocation3], 1 }
0x1716   :  { %2660 = vsyncpa [#allocation3 + $0x1], 1 }

</bundles_post_ra>
